<compile_context>
chip_gen: v7x
topology: tpu7x:2x2x1
jax: 0.10.0
libtpu: 0.0.40
codegen_flags: <defaults>
</compile_context>

<pallas_src>
import functools
import numpy as np

import jax
import jax.numpy as jnp
from jax.experimental import pallas as pl
from jax.experimental.pallas import tpu as pltpu

# ---- downscaled, deterministic constants (small-shape version of the module) ----
MAX_TOKEN = 16          # NodePosition.MAX_TOKEN (512 in the original)
MAX_SENTENCE = 8        # NodePosition.MAX_SENTENCE (128 in the original)
MAX_PARAGRAPH = 7       # synthetic (missing from provided enum)
N_GRAPH = MAX_SENTENCE + MAX_PARAGRAPH + 1   # rows of position_embeddings
N_NODES = MAX_TOKEN + N_GRAPH                # st_mask.size(1)
HIDDEN = 128

EDGE_TOKEN_TO_SENTENCE = 0       # EdgeType.TOKEN_TO_SENTENCE
EDGE_SENTENCE_TO_PARAGRAPH = 26  # synthetic (missing from provided enum)
EDGE_PARAGRAPH_TO_DOCUMENT = 27  # synthetic (missing from provided enum)

LANE = 128
SUBLANE = 8


def _round_up(x, m):
    return ((x + m - 1) // m) * m


def _make_kernel(B, T, G, Np, BNp):
    """Build the Initializer kernel for static shapes (B batches, Np-aligned stride)."""
    N = T + G

    def kernel(hidden_ref, stg_ref, pos_ref,
               src0_ref, tgt0_ref, src1_ref, tgt1_ref, src2_ref, tgt2_ref,
               out_ref):
        H = hidden_ref.shape[2]

        # ---- build flattened graph_hidden directly in out_ref (no scratch) ----
        # mask compare hoisted out of the per-batch loop; (B,G,H) product once.
        gmask = (stg_ref[...] == 1).astype(jnp.float32)          # (B, G, 1)
        masked_pos = pos_ref[...][None] * gmask                  # (B, G, H)

        for b in range(B):                                        # B tiny & static
            out_ref[pl.ds(b * Np, T), :] = hidden_ref[b]          # token rows
            out_ref[pl.ds(b * Np + T, G), :] = masked_pos[b]      # masked pos-emb rows
            if Np > N:                                            # zero only pad rows
                out_ref[pl.ds(b * Np + N, Np - N), :] = jnp.zeros(
                    (Np - N, H), jnp.float32)
        if BNp > B * Np:                                          # zero only global tail
            out_ref[pl.ds(B * Np, BNp - B * Np), :] = jnp.zeros(
                (BNp - B * Np, H), jnp.float32)

        # ---- one average-pooling step over this pool's type-partitioned edge slice ----
        def pool(src_ref, tgt_ref):
            Ep = src_ref.shape[0]                                 # padded edges (mult of 128)
            src = src_ref[...]                                    # (Ep, 1) sublane-varying
            tgt_t = tgt_ref[...]                                  # (1, Ep) lane-varying

            lane_nodes = jax.lax.broadcasted_iota(jnp.int32, (Ep, BNp), 1)
            oh_src = (lane_nodes == src).astype(jnp.float32)      # (Ep, BNp) gather one-hot

            sub_nodes = jax.lax.broadcasted_iota(jnp.int32, (BNp, Ep), 0)
            oh_tgt_t = (sub_nodes == tgt_t).astype(jnp.float32)   # (BNp, Ep) scatter one-hot

            n_edges = jnp.sum(oh_tgt_t, axis=1, keepdims=True)    # (BNp, 1)
            # rows with n_edges == 0 are already all-zero in oh_tgt_t -> no where() needed
            w = oh_tgt_t * pl.reciprocal(jnp.maximum(n_edges, 1.0), approx=False)

            cur = out_ref[...]                                    # (BNp, H)
            gathered = jnp.dot(oh_src, cur,
                               preferred_element_type=jnp.float32)          # (Ep, H)
            out_ref[...] = cur + jnp.dot(w, gathered,
                                         preferred_element_type=jnp.float32)

        pool(src0_ref, tgt0_ref)   # TOKEN_TO_SENTENCE
        pool(src1_ref, tgt1_ref)   # SENTENCE_TO_PARAGRAPH
        pool(src2_ref, tgt2_ref)   # PARAGRAPH_TO_DOCUMENT

    return kernel


@jax.jit
def _initializer_pallas(hidden_states, st_graph, pos_emb,
                        src0, tgt0, src1, tgt1, src2, tgt2):
    B, T, H = hidden_states.shape
    G = pos_emb.shape[0]
    N = T + G
    Np = _round_up(N, SUBLANE)              # sublane-aligned per-batch node stride
    BNp = _round_up(B * Np, LANE)           # lane-dense node axis for the one-hots

    vmem = pl.BlockSpec(memory_space=pltpu.MemorySpace.VMEM)
    out_flat = pl.pallas_call(
        _make_kernel(B, T, G, Np, BNp),
        out_shape=jax.ShapeDtypeStruct((BNp, H), jnp.float32),
        in_specs=[vmem] * 9,
        out_specs=vmem,
    )(hidden_states, st_graph, pos_emb, src0, tgt0, src1, tgt1, src2, tgt2)

    # un-pad: (BNp,H) -> (B,Np,H) -> (B,N,H); wrapper-side slicing only.
    return out_flat[:B * Np].reshape(B, Np, H)[:, :N, :]


def initializer_forward(hidden_states, st_mask, pos_emb, edges_src, edges_tgt,
                        edges_type):
    """Host wrapper: partitions edges by type (mirrors .nonzero().tolist() in the
    reference, which is inherently host-side / data-dependent) and remaps flattened
    node indices b*N+i -> b*Np+i for the sublane-aligned stride."""
    B, T, H = hidden_states.shape
    N = st_mask.shape[1]
    G = N - T
    Np = _round_up(N, SUBLANE)

    src = np.asarray(edges_src, np.int64)
    tgt = np.asarray(edges_tgt, np.int64)
    typ = np.asarray(edges_type, np.int64)

    def remap(idx):
        return (idx // N) * Np + (idx % N)

    packed = []
    for t in (EDGE_TOKEN_TO_SENTENCE, EDGE_SENTENCE_TO_PARAGRAPH,
              EDGE_PARAGRAPH_TO_DOCUMENT):
        sel = typ == t
        s = remap(src[sel]).astype(np.int32)
        g = remap(tgt[sel]).astype(np.int32)
        e = int(s.shape[0])
        ep = max(LANE, _round_up(e, LANE))
        # pad edges: src = tgt = -1 -> never match the node iota -> fully inert.
        s_pad = np.full((ep, 1), -1, np.int32)
        s_pad[:e, 0] = s
        g_pad = np.full((1, ep), -1, np.int32)
        g_pad[0, :e] = g
        packed += [jnp.asarray(s_pad), jnp.asarray(g_pad)]

    st_graph = jnp.asarray(st_mask)[:, T:].astype(jnp.int32).reshape(B, G, 1)
    return _initializer_pallas(jnp.asarray(hidden_states, jnp.float32),
                               st_graph,
                               jnp.asarray(pos_emb, jnp.float32),
                               *packed)


# --------------------------- pure-JAX reference ---------------------------
def reference_forward(hidden_states, st_mask, pos_emb, edges_src, edges_tgt,
                      edges_type):
    B, T, H = hidden_states.shape
    N = st_mask.shape[1]
    gh = jnp.zeros((B, N, H), jnp.float32)
    gh = gh.at[:, :T, :].set(hidden_states)
    mask = (st_mask[:, T:] == 1).astype(jnp.float32)[..., None]
    gh = gh.at[:, T:, :].add(pos_emb[None] * mask)
    ghf = gh.reshape(B * N, H)

    def pool(ghf, type_id):
        sel = edges_type == type_id
        w = sel.astype(jnp.float32)
        gathered = ghf[edges_src] * w[:, None]
        sum_h = jnp.zeros_like(ghf).at[edges_tgt].add(gathered)
        n_edges = jnp.zeros((B * N,), jnp.float32).at[edges_tgt].add(w)
        add = jnp.where(n_edges[:, None] > 0,
                        sum_h / jnp.maximum(n_edges, 1.0)[:, None], 0.0)
        return ghf + add

    ghf = pool(ghf, EDGE_TOKEN_TO_SENTENCE)
    ghf = pool(ghf, EDGE_SENTENCE_TO_PARAGRAPH)
    ghf = pool(ghf, EDGE_PARAGRAPH_TO_DOCUMENT)
    return ghf.reshape(B, N, H)


if __name__ == "__main__":
    B = 2
    key = jax.random.PRNGKey(0)
    k_h, k_p, k_m = jax.random.split(key, 3)

    hidden_states = jax.random.normal(k_h, (B, MAX_TOKEN, HIDDEN), jnp.float32)
    # deterministic parameter init for nn.Embedding(N_GRAPH, HIDDEN)
    pos_emb = 0.02 * jax.random.normal(k_p, (N_GRAPH, HIDDEN), jnp.float32)

    # st_mask: tokens active, most graph nodes active (a couple masked off)
    st_mask = jnp.ones((B, N_NODES), jnp.int32)
    st_mask = st_mask.at[0, MAX_TOKEN + 3].set(0)
    st_mask = st_mask.at[1, MAX_TOKEN + MAX_SENTENCE + 2].set(0)

    # deterministic edges in FLATTENED node indexing (batch b node i -> b*N + i)
    src_list, tgt_list, typ_list = [], [], []
    for b in range(B):
        base = b * N_NODES
        # token -> sentence
        for t in range(MAX_TOKEN):
            s = t // (MAX_TOKEN // MAX_SENTENCE)
            src_list.append(base + t)
            tgt_list.append(base + MAX_TOKEN + s)
            typ_list.append(EDGE_TOKEN_TO_SENTENCE)
        # sentence -> paragraph
        for s in range(MAX_SENTENCE):
            p = s % MAX_PARAGRAPH
            src_list.append(base + MAX_TOKEN + s)
            tgt_list.append(base + MAX_TOKEN + MAX_SENTENCE + p)
            typ_list.append(EDGE_SENTENCE_TO_PARAGRAPH)
        # paragraph -> document (last node)
        for p in range(MAX_PARAGRAPH):
            src_list.append(base + MAX_TOKEN + MAX_SENTENCE + p)
            tgt_list.append(base + N_NODES - 1)
            typ_list.append(EDGE_PARAGRAPH_TO_DOCUMENT)

    edges_src = jnp.array(src_list, jnp.int32)
    edges_tgt = jnp.array(tgt_list, jnp.int32)
    edges_type = jnp.array(typ_list, jnp.int32)

    out = initializer_forward(hidden_states, st_mask, pos_emb,
                              edges_src, edges_tgt, edges_type)
    out = jax.block_until_ready(out)

    ref = reference_forward(hidden_states, st_mask, pos_emb,
                            edges_src, edges_tgt, edges_type)
    assert out.shape == (B, N_NODES, HIDDEN)
    assert jnp.allclose(out, ref, rtol=1e-5, atol=1e-5), "mismatch vs reference"
    print("KERNEL_OK")
</pallas_src>

<mosaic_0001>
module attributes {stable_mosaic.version = 11 : i64} {
  func.func @kernel(%arg0: memref<2x16x128xf32, #tpu.memory_space<vmem>>, %arg1: memref<2x16x1xi32, #tpu.memory_space<vmem>>, %arg2: memref<16x128xf32, #tpu.memory_space<vmem>>, %arg3: memref<128x1xi32, #tpu.memory_space<vmem>>, %arg4: memref<1x128xi32, #tpu.memory_space<vmem>>, %arg5: memref<128x1xi32, #tpu.memory_space<vmem>>, %arg6: memref<1x128xi32, #tpu.memory_space<vmem>>, %arg7: memref<128x1xi32, #tpu.memory_space<vmem>>, %arg8: memref<1x128xi32, #tpu.memory_space<vmem>>, %arg9: memref<128x128xf32, #tpu.memory_space<vmem>>) attributes {dimension_semantics = [], scalar_prefetch = 0 : i64, scratch_operands = 0 : i64, tpu.core_type = #tpu.core_type<tc>} {
    %c0 = arith.constant 0 : index
    %c0_0 = arith.constant 0 : index
    %c0_1 = arith.constant 0 : index
    %0 = vector.load %arg1[%c0, %c0_0, %c0_1] : memref<2x16x1xi32, #tpu.memory_space<vmem>>, vector<2x16x1xi32>
    %c1_i32 = arith.constant 1 : i32
    %1 = vector.broadcast %c1_i32 : i32 to vector<2x16x1xi32>
    %2 = arith.cmpi eq, %0, %1 : vector<2x16x1xi32>
    %3 = arith.extui %2 : vector<2x16x1xi1> to vector<2x16x1xi32>
    %4 = arith.sitofp %3 : vector<2x16x1xi32> to vector<2x16x1xf32>
    %c0_2 = arith.constant 0 : index
    %c0_3 = arith.constant 0 : index
    %5 = vector.load %arg2[%c0_2, %c0_3] : memref<16x128xf32, #tpu.memory_space<vmem>>, vector<16x128xf32>
    %6 = vector.shape_cast %5 : vector<16x128xf32> to vector<1x16x128xf32>
    %7 = vector.broadcast %6 : vector<1x16x128xf32> to vector<2x16x128xf32>
    %8 = vector.broadcast %4 : vector<2x16x1xf32> to vector<2x16x128xf32>
    %9 = arith.mulf %7, %8 : vector<2x16x128xf32>
    %c0_4 = arith.constant 0 : index
    %c0_5 = arith.constant 0 : index
    %c0_6 = arith.constant 0 : index
    %10 = vector.load %arg0[%c0_4, %c0_5, %c0_6] : memref<2x16x128xf32, #tpu.memory_space<vmem>>, vector<1x16x128xf32>
    %11 = vector.shape_cast %10 : vector<1x16x128xf32> to vector<16x128xf32>
    %c0_7 = arith.constant 0 : index
    %c0_8 = arith.constant 0 : index
    %12 = vector.load %arg9[%c0_7, %c0_8] : memref<128x128xf32, #tpu.memory_space<vmem>>, vector<16x128xf32>
    tpu.vector_store %arg9[%c0_7, %c0_8], %11 {strides = array<i32>} : memref<128x128xf32, #tpu.memory_space<vmem>>, vector<16x128xf32>,
    %13 = vector.extract_strided_slice %9 {offsets = [0, 0, 0], sizes = [1, 16, 128], strides = [1, 1, 1]} : vector<2x16x128xf32> to vector<1x16x128xf32>
    %14 = vector.shape_cast %13 : vector<1x16x128xf32> to vector<16x128xf32>
    %c16 = arith.constant 16 : index
    %c0_9 = arith.constant 0 : index
    %15 = vector.load %arg9[%c16, %c0_9] : memref<128x128xf32, #tpu.memory_space<vmem>>, vector<16x128xf32>
    tpu.vector_store %arg9[%c16, %c0_9], %14 {strides = array<i32>} : memref<128x128xf32, #tpu.memory_space<vmem>>, vector<16x128xf32>,
    %c1 = arith.constant 1 : index
    %c0_10 = arith.constant 0 : index
    %c0_11 = arith.constant 0 : index
    %16 = vector.load %arg0[%c1, %c0_10, %c0_11] : memref<2x16x128xf32, #tpu.memory_space<vmem>>, vector<1x16x128xf32>
    %17 = vector.shape_cast %16 : vector<1x16x128xf32> to vector<16x128xf32>
    %c32 = arith.constant 32 : index
    %c0_12 = arith.constant 0 : index
    %18 = vector.load %arg9[%c32, %c0_12] : memref<128x128xf32, #tpu.memory_space<vmem>>, vector<16x128xf32>
    tpu.vector_store %arg9[%c32, %c0_12], %17 {strides = array<i32>} : memref<128x128xf32, #tpu.memory_space<vmem>>, vector<16x128xf32>,
    %19 = vector.extract_strided_slice %9 {offsets = [1, 0, 0], sizes = [1, 16, 128], strides = [1, 1, 1]} : vector<2x16x128xf32> to vector<1x16x128xf32>
    %20 = vector.shape_cast %19 : vector<1x16x128xf32> to vector<16x128xf32>
    %c48 = arith.constant 48 : index
    %c0_13 = arith.constant 0 : index
    %21 = vector.load %arg9[%c48, %c0_13] : memref<128x128xf32, #tpu.memory_space<vmem>>, vector<16x128xf32>
    tpu.vector_store %arg9[%c48, %c0_13], %20 {strides = array<i32>} : memref<128x128xf32, #tpu.memory_space<vmem>>, vector<16x128xf32>,
    %cst = arith.constant 0.000000e+00 : f32
    %22 = vector.broadcast %cst : f32 to vector<64x128xf32>
    %c64 = arith.constant 64 : index
    %c0_14 = arith.constant 0 : index
    %23 = vector.load %arg9[%c64, %c0_14] : memref<128x128xf32, #tpu.memory_space<vmem>>, vector<64x128xf32>
    tpu.vector_store %arg9[%c64, %c0_14], %22 {strides = array<i32>} : memref<128x128xf32, #tpu.memory_space<vmem>>, vector<64x128xf32>,
    %c0_15 = arith.constant 0 : index
    %c0_16 = arith.constant 0 : index
    %24 = vector.load %arg3[%c0_15, %c0_16] : memref<128x1xi32, #tpu.memory_space<vmem>>, vector<128x1xi32>
    %c0_17 = arith.constant 0 : index
    %c0_18 = arith.constant 0 : index
    %25 = vector.load %arg4[%c0_17, %c0_18] : memref<1x128xi32, #tpu.memory_space<vmem>>, vector<1x128xi32>
    %26 = tpu.iota {dimensions = array<i32: 1>} : vector<128x128xi32>
    %27 = vector.broadcast %24 : vector<128x1xi32> to vector<128x128xi32>
    %28 = arith.cmpi eq, %26, %27 : vector<128x128xi32>
    %29 = arith.extui %28 : vector<128x128xi1> to vector<128x128xi32>
    %30 = arith.sitofp %29 : vector<128x128xi32> to vector<128x128xf32>
    %31 = tpu.iota {dimensions = array<i32: 0>} : vector<128x128xi32>
    %32 = vector.broadcast %25 : vector<1x128xi32> to vector<128x128xi32>
    %33 = arith.cmpi eq, %31, %32 : vector<128x128xi32>
    %34 = arith.extui %33 : vector<128x128xi1> to vector<128x128xi32>
    %35 = arith.sitofp %34 : vector<128x128xi32> to vector<128x128xf32>
    %cst_19 = arith.constant dense<0.000000e+00> : vector<128xf32>
    %36 = vector.multi_reduction <add>, %35, %cst_19 [1] : vector<128x128xf32> to vector<128xf32>
    %37 = vector.shape_cast %36 : vector<128xf32> to vector<128x1xf32>
    %cst_20 = arith.constant 1.000000e+00 : f32
    %38 = vector.broadcast %cst_20 : f32 to vector<128x1xf32>
    %39 = arith.maximumf %37, %38 : vector<128x1xf32>
    %40 = tpu.reciprocal %39 : vector<128x1xf32> -> vector<128x1xf32>
    %41 = vector.broadcast %40 : vector<128x1xf32> to vector<128x128xf32>
    %42 = arith.mulf %35, %41 : vector<128x128xf32>
    %c0_21 = arith.constant 0 : index
    %c0_22 = arith.constant 0 : index
    %43 = vector.load %arg9[%c0_21, %c0_22] : memref<128x128xf32, #tpu.memory_space<vmem>>, vector<128x128xf32>
    %cst_23 = arith.constant dense<0.000000e+00> : vector<128x128xf32>
    %44 = tpu.matmul %30, %43, %cst_23 {dimension_numbers = #tpu.dot_dimension_numbers<[1], [0], [0], [1], [0, 0, 1, 1], [], []>} : vector<128x128xf32>, vector<128x128xf32>, vector<128x128xf32> -> vector<128x128xf32>
    %cst_24 = arith.constant dense<0.000000e+00> : vector<128x128xf32>
    %45 = tpu.matmul %42, %44, %cst_24 {dimension_numbers = #tpu.dot_dimension_numbers<[1], [0], [0], [1], [0, 0, 1, 1], [], []>} : vector<128x128xf32>, vector<128x128xf32>, vector<128x128xf32> -> vector<128x128xf32>
    %46 = arith.addf %43, %45 : vector<128x128xf32>
    %c0_25 = arith.constant 0 : index
    %c0_26 = arith.constant 0 : index
    %47 = vector.load %arg9[%c0_25, %c0_26] : memref<128x128xf32, #tpu.memory_space<vmem>>, vector<128x128xf32>
    tpu.vector_store %arg9[%c0_25, %c0_26], %46 {strides = array<i32>} : memref<128x128xf32, #tpu.memory_space<vmem>>, vector<128x128xf32>,
    %c0_27 = arith.constant 0 : index
    %c0_28 = arith.constant 0 : index
    %48 = vector.load %arg5[%c0_27, %c0_28] : memref<128x1xi32, #tpu.memory_space<vmem>>, vector<128x1xi32>
    %c0_29 = arith.constant 0 : index
    %c0_30 = arith.constant 0 : index
    %49 = vector.load %arg6[%c0_29, %c0_30] : memref<1x128xi32, #tpu.memory_space<vmem>>, vector<1x128xi32>
    %50 = tpu.iota {dimensions = array<i32: 1>} : vector<128x128xi32>
    %51 = vector.broadcast %48 : vector<128x1xi32> to vector<128x128xi32>
    %52 = arith.cmpi eq, %50, %51 : vector<128x128xi32>
    %53 = arith.extui %52 : vector<128x128xi1> to vector<128x128xi32>
    %54 = arith.sitofp %53 : vector<128x128xi32> to vector<128x128xf32>
    %55 = tpu.iota {dimensions = array<i32: 0>} : vector<128x128xi32>
    %56 = vector.broadcast %49 : vector<1x128xi32> to vector<128x128xi32>
    %57 = arith.cmpi eq, %55, %56 : vector<128x128xi32>
    %58 = arith.extui %57 : vector<128x128xi1> to vector<128x128xi32>
    %59 = arith.sitofp %58 : vector<128x128xi32> to vector<128x128xf32>
    %cst_31 = arith.constant dense<0.000000e+00> : vector<128xf32>
    %60 = vector.multi_reduction <add>, %59, %cst_31 [1] : vector<128x128xf32> to vector<128xf32>
    %61 = vector.shape_cast %60 : vector<128xf32> to vector<128x1xf32>
    %cst_32 = arith.constant 1.000000e+00 : f32
    %62 = vector.broadcast %cst_32 : f32 to vector<128x1xf32>
    %63 = arith.maximumf %61, %62 : vector<128x1xf32>
    %64 = tpu.reciprocal %63 : vector<128x1xf32> -> vector<128x1xf32>
    %65 = vector.broadcast %64 : vector<128x1xf32> to vector<128x128xf32>
    %66 = arith.mulf %59, %65 : vector<128x128xf32>
    %c0_33 = arith.constant 0 : index
    %c0_34 = arith.constant 0 : index
    %67 = vector.load %arg9[%c0_33, %c0_34] : memref<128x128xf32, #tpu.memory_space<vmem>>, vector<128x128xf32>
    %cst_35 = arith.constant dense<0.000000e+00> : vector<128x128xf32>
    %68 = tpu.matmul %54, %67, %cst_35 {dimension_numbers = #tpu.dot_dimension_numbers<[1], [0], [0], [1], [0, 0, 1, 1], [], []>} : vector<128x128xf32>, vector<128x128xf32>, vector<128x128xf32> -> vector<128x128xf32>
    %cst_36 = arith.constant dense<0.000000e+00> : vector<128x128xf32>
    %69 = tpu.matmul %66, %68, %cst_36 {dimension_numbers = #tpu.dot_dimension_numbers<[1], [0], [0], [1], [0, 0, 1, 1], [], []>} : vector<128x128xf32>, vector<128x128xf32>, vector<128x128xf32> -> vector<128x128xf32>
    %70 = arith.addf %67, %69 : vector<128x128xf32>
    %c0_37 = arith.constant 0 : index
    %c0_38 = arith.constant 0 : index
    %71 = vector.load %arg9[%c0_37, %c0_38] : memref<128x128xf32, #tpu.memory_space<vmem>>, vector<128x128xf32>
    tpu.vector_store %arg9[%c0_37, %c0_38], %70 {strides = array<i32>} : memref<128x128xf32, #tpu.memory_space<vmem>>, vector<128x128xf32>,
    %c0_39 = arith.constant 0 : index
    %c0_40 = arith.constant 0 : index
    %72 = vector.load %arg7[%c0_39, %c0_40] : memref<128x1xi32, #tpu.memory_space<vmem>>, vector<128x1xi32>
    %c0_41 = arith.constant 0 : index
    %c0_42 = arith.constant 0 : index
    %73 = vector.load %arg8[%c0_41, %c0_42] : memref<1x128xi32, #tpu.memory_space<vmem>>, vector<1x128xi32>
    %74 = tpu.iota {dimensions = array<i32: 1>} : vector<128x128xi32>
    %75 = vector.broadcast %72 : vector<128x1xi32> to vector<128x128xi32>
    %76 = arith.cmpi eq, %74, %75 : vector<128x128xi32>
    %77 = arith.extui %76 : vector<128x128xi1> to vector<128x128xi32>
    %78 = arith.sitofp %77 : vector<128x128xi32> to vector<128x128xf32>
    %79 = tpu.iota {dimensions = array<i32: 0>} : vector<128x128xi32>
    %80 = vector.broadcast %73 : vector<1x128xi32> to vector<128x128xi32>
    %81 = arith.cmpi eq, %79, %80 : vector<128x128xi32>
    %82 = arith.extui %81 : vector<128x128xi1> to vector<128x128xi32>
    %83 = arith.sitofp %82 : vector<128x128xi32> to vector<128x128xf32>
    %cst_43 = arith.constant dense<0.000000e+00> : vector<128xf32>
    %84 = vector.multi_reduction <add>, %83, %cst_43 [1] : vector<128x128xf32> to vector<128xf32>
    %85 = vector.shape_cast %84 : vector<128xf32> to vector<128x1xf32>
    %cst_44 = arith.constant 1.000000e+00 : f32
    %86 = vector.broadcast %cst_44 : f32 to vector<128x1xf32>
    %87 = arith.maximumf %85, %86 : vector<128x1xf32>
    %88 = tpu.reciprocal %87 : vector<128x1xf32> -> vector<128x1xf32>
    %89 = vector.broadcast %88 : vector<128x1xf32> to vector<128x128xf32>
    %90 = arith.mulf %83, %89 : vector<128x128xf32>
    %c0_45 = arith.constant 0 : index
    %c0_46 = arith.constant 0 : index
    %91 = vector.load %arg9[%c0_45, %c0_46] : memref<128x128xf32, #tpu.memory_space<vmem>>, vector<128x128xf32>
    %cst_47 = arith.constant dense<0.000000e+00> : vector<128x128xf32>
    %92 = tpu.matmul %78, %91, %cst_47 {dimension_numbers = #tpu.dot_dimension_numbers<[1], [0], [0], [1], [0, 0, 1, 1], [], []>} : vector<128x128xf32>, vector<128x128xf32>, vector<128x128xf32> -> vector<128x128xf32>
    %cst_48 = arith.constant dense<0.000000e+00> : vector<128x128xf32>
    %93 = tpu.matmul %90, %92, %cst_48 {dimension_numbers = #tpu.dot_dimension_numbers<[1], [0], [0], [1], [0, 0, 1, 1], [], []>} : vector<128x128xf32>, vector<128x128xf32>, vector<128x128xf32> -> vector<128x128xf32>
    %94 = arith.addf %91, %93 : vector<128x128xf32>
    %c0_49 = arith.constant 0 : index
    %c0_50 = arith.constant 0 : index
    %95 = vector.load %arg9[%c0_49, %c0_50] : memref<128x128xf32, #tpu.memory_space<vmem>>, vector<128x128xf32>
    tpu.vector_store %arg9[%c0_49, %c0_50], %94 {strides = array<i32>} : memref<128x128xf32, #tpu.memory_space<vmem>>, vector<128x128xf32>,
    return
  }
}

</mosaic_0001>

<bundles_post_ra>
// kernel: _initializer_pallas.1
= control target key start
LH: loop header
LB: loop body
LE: loop exit
PB: predicated region body
PF: predicated region fallthrough
CT: control target
= control target key end

     0   :  { %v2851_v0 = vmov 0   ;;  %v3831_v6 = vmov 0.0   ;;  %v112_v31 = vlaneseq  ;;  %s3819_s3 = inlined_call_operand.vmem [shape: s32[128,1], index: 3, kind: input, shape index: {}]   ;;  %s3820_s1 = inlined_call_operand.vmem [shape: s32[2,16,1], index: 1, kind: input, shape index: {}]   ;;  %s3821_s0 = inlined_call_operand.vmem [shape: f32[2,16,128], index: 0, kind: input, shape index: {}]   ;;  %s3822_s4 = inlined_call_operand.vmem [shape: s32[1,128], index: 4, kind: input, shape index: {}]   ;;  %s3823_s5 = inlined_call_operand.vmem [shape: s32[128,1], index: 5, kind: input, shape index: {}]   ;;  %s3824_s2 = inlined_call_operand.vmem [shape: f32[16,128], index: 2, kind: input, shape index: {}]   ;;  %s3825_s6 = inlined_call_operand.vmem [shape: s32[1,128], index: 6, kind: input, shape index: {}]   ;;  %s3826_s7 = inlined_call_operand.vmem [shape: s32[128,1], index: 7, kind: input, shape index: {}]   ;;  %s3827_s8 = inlined_call_operand.vmem [shape: s32[1,128], index: 8, kind: input, shape index: {}]   ;;  %s3828_s9 = inlined_call_operand.vmem [shape: f32[128,128], index: 9, kind: output, shape index: {}]  }
   0x1   :  { %2754 = vset.pattern.permute.xlu1 %v2851_v0  ;;  %v95_v1 = vld [vmem:[%s3819_s3] sm:$0xff]  ;;  %2743 = vset.pattern.permute.xlu0 %v2851_v0  ;;  %v33_v3 = vld [vmem:[%s3820_s1 + $0x8] sm:$0xff]  ;;  %v34_v4 = vld [vmem:[%s3820_s1 + $0x10] sm:$0xff] }
   0x2   :  { %v32_v2 = vld [vmem:[%s3820_s1] sm:$0xff]  ;;  %115 = vperm.xlu1 %2754, %v95_v1   ;;  %v96_v5 = vld [vmem:[%s3819_s3 + $0x8] sm:$0xff]  ;;  %vm37_vm1 = vcmp.eq.s32.totalorder %v33_v3, 1  ;;  %v35_v8 = vld [vmem:[%s3820_s1 + $0x18] sm:$0xff]  ;;  %vm38_vm2 = vcmp.eq.s32.totalorder %v34_v4, 1  ;;  %v2982_v32 = vshrl.u32 %v112_v31, 7 }
   0x3   :  { %vm36_vm0 = vcmp.eq.s32.totalorder %v32_v2, 1  ;;  %v1868_v9 = vsel %vm37_vm1, 1.0, %v3831_v6  ;;  %vm39_vm3 = vcmp.eq.s32.totalorder %v35_v8, 1  ;;  %v1869_v10 = vsel %vm38_vm2, 1.0, %v3831_v6  ;;  %v98_v13 = vld [vmem:[%s3819_s3 + $0x18] sm:$0xff]  ;;  %v100_v15 = vld [vmem:[%s3819_s3 + $0x28] sm:$0xff] }
   0x4   :  { %v1867_v7 = vsel %vm36_vm0, 1.0, %v3831_v6  ;;  %v1870_v12 = vsel %vm39_vm3, 1.0, %v3831_v6  ;;  %v97_v16 = vld [vmem:[%s3819_s3 + $0x10] sm:$0xff]  ;;  %v102_v17 = vld [vmem:[%s3819_s3 + $0x38] sm:$0xff]  ;;  %v2942_v18 = vld [vmem:[%s3821_s0] sm:$0xff]  ;;  %3851 = vst [vmem:[#allocation2_spill] sm:$0xff] %v2982_v32 }
   0x5   :  { %v2744_v11 = vpack.i.bf16 %v1868_v9, %v1867_v7  ;;  %v2749_v14 = vpack.i.bf16 %v1870_v12, %v1869_v10  ;;  %v2947_v19 = vld [vmem:[%s3821_s0 + $0x8] sm:$0xff]  ;;  %v99_v20 = vld [vmem:[%s3819_s3 + $0x20] sm:$0xff]  ;;  %v101_v23 = vld [vmem:[%s3819_s3 + $0x30] sm:$0xff]  ;;  %v2985_v33 = vadd.s32 8, %v2982_v32  ;;  %v2993_v35 = vadd.s32 16, %v2982_v32 }
   0x6   :  { %118 = vperm.xlu1 %2754, %v96_v5   ;;  %v2548_v21 = vpack.c.bf16 %v2947_v19, %v2942_v18  ;;  %v104_v22 = vld [vmem:[%s3819_s3 + $0x48] sm:$0xff]  ;;  %v106_v24 = vld [vmem:[%s3819_s3 + $0x58] sm:$0xff]  ;;  %v103_v25 = vld [vmem:[%s3819_s3 + $0x40] sm:$0xff]  ;;  %v2996_v36 = vadd.s32 32, %v2982_v32  ;;  %v3007_v39 = vadd.s32 24, %v2982_v32  ;;  %v3010_v40 = vadd.s32 48, %v2982_v32 }
   0x7   :  { %2745 = vperm.xlu0 %2743, %v2744_v11   ;;  %v108_v26 = vld [vmem:[%s3819_s3 + $0x68] sm:$0xff]  ;;  %v105_v27 = vld [vmem:[%s3819_s3 + $0x50] sm:$0xff]  ;;  %v110_v28 = vld [vmem:[%s3819_s3 + $0x78] sm:$0xff]  ;;  %3852 = vst [vmem:[#allocation3_spill] sm:$0xff] %v2985_v33  ;;  %v3023_v43 = vadd.s32 40, %v2982_v32  ;;  %v3026_v44 = vadd.s32 64, %v2982_v32 }
   0x8   :  { %2549 = vmatprep.subr.bf16.mxu0 %v2548_v21  ;;  %v107_v29 = vld [vmem:[%s3819_s3 + $0x60] sm:$0xff]  ;;  %v109_v30 = vld [vmem:[%s3819_s3 + $0x70] sm:$0xff]  ;;  %3853 = vst [vmem:[#allocation4_spill] sm:$0xff] %v2993_v35  ;;  %3854 = vst [vmem:[#allocation5_spill] sm:$0xff] %v2996_v36  ;;  %v3039_v47 = vadd.s32 56, %v2982_v32  ;;  %v3042_v48 = vadd.s32 80, %v2982_v32 }
   0x9   :  { %2551 = vmatpush3.bf16.msra.mxu0 %v2548_v21  ;;  %v1889_v34 = vld [vmem:[%s3822_s4] ss:$0 sm:$0xff]  ;;  %3855 = vst [vmem:[#allocation6_spill] sm:$0xff] %v3007_v39  ;;  %3856 = vst [vmem:[#allocation7_spill] sm:$0xff] %v3010_v40  ;;  %v3055_v51 = vadd.s32 72, %v2982_v32  ;;  %v3058_v52 = vadd.s32 96, %v2982_v32 }
   0xa   :  { %124 = vperm.xlu1 %2754, %v98_v13   ;;  %vm231_vm4 = vcmp.eq.s32.totalorder %v2982_v32, %v1889_v34  ;;  %vm232_vm5 = vcmp.eq.s32.totalorder %v2985_v33, %v1889_v34  ;;  %vm233_vm6 = vcmp.eq.s32.totalorder %v2993_v35, %v1889_v34  ;;  %vm235_vm7 = vcmp.eq.s32.totalorder %v2996_v36, %v1889_v34  ;;  %v697_v1 = vld [vmem:[%s3823_s5] sm:$0xff]  ;;  %v699_v2 = vld [vmem:[%s3823_s5 + $0x10] sm:$0xff]  ;;  %v700_v3 = vld [vmem:[%s3823_s5 + $0x18] sm:$0xff] }
   0xb   :  { %2750 = vperm.xlu0 %2743, %v2749_v14   ;;  %v2999_v37 = vsel %vm231_vm4, 1.0, %v3831_v6  ;;  %v3002_v38 = vsel %vm232_vm5, 1.0, %v3831_v6  ;;  %v3015_v41 = vsel %vm233_vm6, 1.0, %v3831_v6  ;;  %v3018_v42 = vsel %vm235_vm7, 1.0, %v3831_v6  ;;  %3857 = vst [vmem:[#allocation8_spill] sm:$0xff] %v3023_v43  ;;  %3858 = vst [vmem:[#allocation9_spill] sm:$0xff] %v3026_v44 }
   0xc   :  { %vm234_vm8 = vcmp.eq.s32.totalorder %v3007_v39, %v1889_v34  ;;  %vm237_vm9 = vcmp.eq.s32.totalorder %v3010_v40, %v1889_v34  ;;  %vm236_vm10 = vcmp.eq.s32.totalorder %v3023_v43, %v1889_v34  ;;  %vm239_vm11 = vcmp.eq.s32.totalorder %v3026_v44, %v1889_v34  ;;  %3859 = vst [vmem:[#allocation10_spill] sm:$0xff] %v3039_v47  ;;  %v702_v4 = vld [vmem:[%s3823_s5 + $0x28] sm:$0xff]  ;;  %v704_v7 = vld [vmem:[%s3823_s5 + $0x38] sm:$0xff]  ;;  %v701_v8 = vld [vmem:[%s3823_s5 + $0x20] sm:$0xff] }
   0xd   :  { %v3031_v45 = vsel %vm234_vm8, 1.0, %v3831_v6  ;;  %v3034_v46 = vsel %vm237_vm9, 1.0, %v3831_v6  ;;  %3860 = vst [vmem:[#allocation11_spill] sm:$0xff] %v3042_v48  ;;  %v3047_v49 = vsel %vm236_vm10, 1.0, %v3831_v6  ;;  %v3050_v50 = vsel %vm239_vm11, 1.0, %v3831_v6  ;;  %3861 = vst [vmem:[#allocation12_spill] sm:$0xff] %v3055_v51 }
   0xe   :  { %130 = vperm.xlu1 %2754, %v100_v15   ;;  %vm238_vm12 = vcmp.eq.s32.totalorder %v3039_v47, %v1889_v34  ;;  %vm241_vm13 = vcmp.eq.s32.totalorder %v3042_v48, %v1889_v34  ;;  %3862 = vst [vmem:[#allocation13_spill] sm:$0xff] %v3058_v52  ;;  %vm240_vm14 = vcmp.eq.s32.totalorder %v3055_v51, %v1889_v34  ;;  %v3071_v55 = vadd.s32 88, %v2982_v32  ;;  %v698_v5 = vld [vmem:[%s3823_s5 + $0x8] sm:$0xff]  ;;  %v703_v11 = vld [vmem:[%s3823_s5 + $0x30] sm:$0xff]  ;;  %v708_v14 = vld [vmem:[%s3823_s5 + $0x58] sm:$0xff] }
   0xf   :  { %121 = vperm.xlu0 %2743, %v97_v16   ;;  %v3063_v53 = vsel %vm238_vm12, 1.0, %v3831_v6  ;;  %v3066_v54 = vsel %vm241_vm13, 1.0, %v3831_v6  ;;  %vm243_vm15 = vcmp.eq.s32.totalorder %v3058_v52, %v1889_v34  ;;  %v3074_v56 = vadd.s32 112, %v2982_v32  ;;  %v706_v10 = vld [vmem:[%s3823_s5 + $0x48] sm:$0xff]  ;;  %v705_v15 = vld [vmem:[%s3823_s5 + $0x40] sm:$0xff] }
  0x10   :  { %3863 = vst [vmem:[#allocation14_spill] sm:$0xff] %v3071_v55  ;;  %v3079_v57 = vsel %vm240_vm14, 1.0, %v3831_v6  ;;  %v3082_v58 = vsel %vm243_vm15, 1.0, %v3831_v6  ;;  %vm242_vm0 = vcmp.eq.s32.totalorder %v3071_v55, %v1889_v34  ;;  %v3087_v59 = vadd.s32 104, %v2982_v32 }
  0x11   :  { %3864 = vst [vmem:[#allocation15_spill] sm:$0xff] %v3074_v56  ;;  %vm245_vm1 = vcmp.eq.s32.totalorder %v3074_v56, %v1889_v34  ;;  %v3092_v60 = vsel %vm242_vm0, 1.0, %v3831_v6  ;;  %v3099_v62 = vadd.s32 120, %v2982_v32  ;;  %v3134_v9 = vand.u32 127, %v112_v31 }
  0x12   :  { %136 = vperm.xlu1 %2754, %v102_v17   ;;  %3865 = vst [vmem:[#allocation16_spill] sm:$0xff] %v3087_v59  ;;  %v3095_v61 = vsel %vm245_vm1, 1.0, %v3831_v6  ;;  %vm244_vm2 = vcmp.eq.s32.totalorder %v3087_v59, %v1889_v34  ;;  %v3829_v13 = vmov 1.0   ;;  %v48_v17 = vld [vmem:[%s3824_s2] sm:$0xff] }
  0x13   :  { %127 = vperm.xlu0 %2743, %v99_v20   ;;  %3866 = vst [vmem:[#allocation17_spill] sm:$0xff] %v3099_v62  ;;  %v3104_v63 = vsel %vm244_vm2, 1.0, %v3831_v6  ;;  %vm246_vm3 = vcmp.eq.s32.totalorder %v3099_v62, %v1889_v34  ;;  %v49_v20 = vld [vmem:[%s3824_s2 + $0x8] sm:$0xff] }
  0x14   :  { %v3109_v0 = vsel %vm246_vm3, 1.0, %v3831_v6 }
  0x16   :  { %142 = vperm.xlu1 %2754, %v104_v22  }
  0x17   :  { %133 = vperm.xlu0 %2743, %v101_v23   ;;  %v710_v23 = vld [vmem:[%s3823_s5 + $0x68] sm:$0xff] }
  0x1a   :  { %148 = vperm.xlu1 %2754, %v106_v24   ;;  %v3162_v24 = vld [vmem:[%s3821_s0 + $0x10] sm:$0xff] }
  0x1b   :  { %139 = vperm.xlu0 %2743, %v103_v25   ;;  %v3167_v25 = vld [vmem:[%s3821_s0 + $0x18] sm:$0xff] }
  0x1e   :  { %154 = vperm.xlu1 %2754, %v108_v26  }
  0x1f   :  { %145 = vperm.xlu0 %2743, %v105_v27  }
  0x22   :  { %160 = vperm.xlu1 %2754, %v110_v28   ;;  %v707_v28 = vld [vmem:[%s3823_s5 + $0x50] sm:$0xff] }
  0x23   :  { %151 = vperm.xlu0 %2743, %v107_v29  }
  0x27   :  { %157 = vperm.xlu0 %2743, %v109_v30  }
  0x46   :  { %279 = vadd.xlane.f32.xlu0 %v2999_v37  ;;  %281 = vadd.xlane.f32.xlu1 %v3002_v38 }
  0x4a   :  { %283 = vadd.xlane.f32.xlu0 %v3015_v41  ;;  %287 = vadd.xlane.f32.xlu1 %v3018_v42 }
  0x4e   :  { %285 = vadd.xlane.f32.xlu0 %v3031_v45  ;;  %291 = vadd.xlane.f32.xlu1 %v3034_v46 }
  0x52   :  { %289 = vadd.xlane.f32.xlu0 %v3047_v49  ;;  %295 = vadd.xlane.f32.xlu1 %v3050_v50 }
  0x56   :  { %293 = vadd.xlane.f32.xlu0 %v3063_v53  ;;  %299 = vadd.xlane.f32.xlu1 %v3066_v54 }
  0x5a   :  { %297 = vadd.xlane.f32.xlu0 %v3079_v57  ;;  %303 = vadd.xlane.f32.xlu1 %v3082_v58 }
  0x5e   :  { %301 = vadd.xlane.f32.xlu0 %v3092_v60  ;;  %307 = vadd.xlane.f32.xlu1 %v3095_v61 }
  0x62   :  { %305 = vadd.xlane.f32.xlu0 %v3104_v63 }
  0x66   :  { %309 = vadd.xlane.f32.xlu0 %v3109_v0 }
  0x6f   :  { %715 = vperm.xlu1 %2754, %v697_v1   ;;  %v2556_v1 = vpack.c.bf16 %v3167_v25, %v3162_v24 }
  0x73   :  { %721 = vperm.xlu1 %2754, %v699_v2   ;;  %v712_v2 = vld [vmem:[%s3823_s5 + $0x78] sm:$0xff] }
  0x77   :  { %724 = vperm.xlu1 %2754, %v700_v3  }
  0x7b   :  { %730 = vperm.xlu1 %2754, %v702_v4  }
  0x7c   :  { %718 = vperm.xlu0 %2743, %v698_v5   ;;  %v709_v5 = vld [vmem:[%s3823_s5 + $0x60] sm:$0xff] }
  0x7f   :  { %736 = vperm.xlu1 %2754, %v704_v7   ;;  %v711_v7 = vld [vmem:[%s3823_s5 + $0x70] sm:$0xff] }
  0x80   :  { %727 = vperm.xlu0 %2743, %v701_v8  }
  0x81   :  { %v116_v12 = vpop.permute.xlu1 %115 }
  0x82   :  { %vm162_vm4 = vcmp.eq.s32.totalorder %v3134_v9, %v116_v12 }
  0x83   :  { %742 = vperm.xlu1 %2754, %v706_v10   ;;  %2244 = vmatprep.mubr.msk.f32.mxu0 %vm162_vm4, %v3829_v13 }
  0x84   :  { %733 = vperm.xlu0 %2743, %v703_v11   ;;  %v2854_v11 = vmov 0.0|0.0  }
  0x85   :  { %v119_v10 = vpop.permute.xlu1 %118 }
  0x86   :  { %v2746_v16 = vpop.permute.xlu0 %2745  ;;  %vm163_vm5 = vcmp.eq.s32.totalorder %v3134_v9, %v119_v10 }
  0x87   :  { %v2748_v21 = vunpack.i.h.bf16 %v2746_v16  ;;  %v2747_v22 = vunpack.i.l.bf16 %v2746_v16  ;;  %748 = vperm.xlu1 %2754, %v708_v14  }
  0x88   :  { %739 = vperm.xlu0 %2743, %v705_v15  }
  0x89   :  { %v3169_v26 = vmul.f32 %v2747_v22, %v48_v17  ;;  %v3171_v27 = vmul.f32 %v2748_v21, %v49_v20  ;;  %v125_v14 = vpop.permute.xlu1 %124  ;;  %v3202_v21 = vld [vmem:[%s3825_s6] ss:$0 sm:$0xff] }
  0x8a   :  { %v2751_v29 = vpop.permute.xlu0 %2750  ;;  %vm165_vm7 = vcmp.eq.s32.totalorder %v3134_v9, %v125_v14  ;;  %vm814_vm9 = vcmp.eq.s32.totalorder %v2982_v32, %v3202_v21  ;;  %vm815_vm10 = vcmp.eq.s32.totalorder %v2985_v33, %v3202_v21  ;;  %vm816_vm13 = vcmp.eq.s32.totalorder %v2993_v35, %v3202_v21 }
  0x8b   :  { %v2753_v30 = vunpack.i.h.bf16 %v2751_v29  ;;  %v2752_v31 = vunpack.i.l.bf16 %v2751_v29  ;;  %754 = vperm.xlu1 %2754, %v710_v23   ;;  %v2552_v34 = vpack.c.bf16 %v3171_v27, %v3169_v26  ;;  %v3217_v29 = vsel %vm815_vm10, 1.0, %v3831_v6 }
  0x8c   :  { %745 = vperm.xlu0 %2743, %v707_v28   ;;  %v3214_v28 = vsel %vm814_vm9, 1.0, %v3831_v6  ;;  %vm818_vm14 = vcmp.eq.s32.totalorder %v2996_v36, %v3202_v21  ;;  %vm817_vm1 = vcmp.eq.s32.totalorder %v3007_v39, %v3202_v21  ;;  %vm820_vm2 = vcmp.eq.s32.totalorder %v3010_v40, %v3202_v21 }
  0x8d   :  { %v3183_v3 = vmul.f32 %v2753_v30, %v49_v20  ;;  %v3185_v4 = vmul.f32 %v2752_v31, %v48_v17  ;;  %2553 = vmatprep.subr.bf16.mxu0 %v2552_v34  ;;  %v131_v16 = vpop.permute.xlu1 %130  ;;  %v3230_v31 = vsel %vm816_vm13, 1.0, %v3831_v6  ;;  %vm821_vm9 = vcmp.eq.s32.totalorder %v3039_v47, %v3202_v21 }
  0x8e   :  { %2555 = vmatpush3.bf16.msra.mxu0 %v2552_v34  ;;  %v122_v12 = vpop.permute.xlu0 %121  ;;  %vm167_vm11 = vcmp.eq.s32.totalorder %v3134_v9, %v131_v16  ;;  %v3233_v34 = vsel %vm818_vm14, 1.0, %v3831_v6  ;;  %vm824_vm10 = vcmp.eq.s32.totalorder %v3042_v48, %v3202_v21  ;;  %v3278_v14 = vsel %vm821_vm9, 1.0, %v3831_v6  ;;  %v1293_v48 = vld [vmem:[%s3826_s7 + $0x68] sm:$0xff] }
  0x8f   :  { %760 = vperm.xlu1 %2754, %v712_v2   ;;  %2557 = vmatprep.subr.bf16.mxu0 %v2556_v1  ;;  %v2560_v8 = vpack.c.bf16 %v3183_v3, %v3185_v4  ;;  %vm164_vm6 = vcmp.eq.s32.totalorder %v3134_v9, %v122_v12  ;;  %vm823_vm13 = vcmp.eq.s32.totalorder %v3055_v51, %v3202_v21  ;;  %v3869_v51 = vmov 1.0  }
  0x90   :  { %751 = vperm.xlu0 %2743, %v709_v5   ;;  %v3246_v5 = vsel %vm817_vm1, 1.0, %v3831_v6  ;;  %vm826_vm14 = vcmp.eq.s32.totalorder %v3058_v52, %v3202_v21  ;;  %vm828_vm1 = vcmp.eq.s32.totalorder %v3074_v56, %v3202_v21  ;;  %v1289_v52 = vld [vmem:[%s3826_s7 + $0x48] sm:$0xff] }
  0x91   :  { %v137_v20 = vpop.permute.xlu1 %136 }
  0x92   :  { %2559 = vmatpush3.bf16.msra.mxu0 %v2556_v1  ;;  %v128_v15 = vpop.permute.xlu0 %127  ;;  %vm169_vm15 = vcmp.eq.s32.totalorder %v3134_v9, %v137_v20  ;;  %v3297_v20 = vsel %vm826_vm14, 1.0, %v3831_v6 }
  0x93   :  { %2561 = vmatprep.subr.bf16.mxu0 %v2560_v8  ;;  %vm166_vm8 = vcmp.eq.s32.totalorder %v3134_v9, %v128_v15  ;;  %v3281_v15 = vsel %vm824_vm10, 1.0, %v3831_v6 }
  0x94   :  { %757 = vperm.xlu0 %2743, %v711_v7   ;;  %v3249_v7 = vsel %vm820_vm2, 1.0, %v3831_v6  ;;  %vm827_vm2 = vcmp.eq.s32.totalorder %v3087_v59, %v3202_v21  ;;  %v1285_v59 = vld [vmem:[%s3826_s7 + $0x28] sm:$0xff] }
  0x95   :  { %v143_v23 = vpop.permute.xlu1 %142 }
  0x96   :  { %2563 = vmatpush3.bf16.msra.mxu0 %v2560_v8  ;;  %v134_v17 = vpop.permute.xlu0 %133  ;;  %vm171_vm3 = vcmp.eq.s32.totalorder %v3134_v9, %v143_v23  ;;  %v3310_v23 = vsel %vm828_vm1, 1.0, %v3831_v6 }
  0x97   :  { %2565 = vmatprep.subr.bf16.mxu0 %v2854_v11  ;;  %vm168_vm12 = vcmp.eq.s32.totalorder %v3134_v9, %v134_v17  ;;  %v3294_v17 = vsel %vm823_vm13, 1.0, %v3831_v6  ;;  %3867 = vst [vmem:[#allocation18_spill] sm:$0xff] %v3310_v23 }
  0x99   :  { %v149_v1 = vpop.permute.xlu1 %148 }
  0x9a   :  { %2567 = vmatpush3.bf16.msra.mxu0 %v2854_v11  ;;  %v140_v22 = vpop.permute.xlu0 %139 }
  0x9b   :  { %2569 = vmatprep.subr.bf16.mxu0 %v2854_v11  ;;  %vm170_vm0 = vcmp.eq.s32.totalorder %v3134_v9, %v140_v22 }
  0x9d   :  { %v155_v8 = vpop.permute.xlu1 %154 }
  0x9e   :  { %2571 = vmatpush3.bf16.msra.mxu0 %v2854_v11  ;;  %v146_v30 = vpop.permute.xlu0 %145 }
  0x9f   :  { %2573 = vmatprep.subr.bf16.mxu0 %v2854_v11  ;;  %vm172_vm4 = vcmp.eq.s32.totalorder %v3134_v9, %v146_v30  ;;  %v3317_v30 = vsel %vm827_vm2, 1.0, %v3831_v6 }
  0xa1   :  { %v161_v16 = vpop.permute.xlu1 %160 }
  0xa2   :  { %2575 = vmatpush3.bf16.msra.mxu0 %v2854_v11  ;;  %v152_v2 = vpop.permute.xlu0 %151 }
  0xa3   :  { %2577 = vmatprep.subr.bf16.mxu0 %v2854_v11 }
  0xa6   :  { %2579 = vmatpush3.bf16.msra.mxu0 %v2854_v11  ;;  %v158_v12 = vpop.permute.xlu0 %157 }
  0xa9   :  { %2245 = vmatmul.mubr.msk.f32.vlgmr.msra.gmra.mrb[0].mxu0 %vm163_vm5, %v3829_v13  ;;  %vm819_vm5 = vcmp.eq.s32.totalorder %v3023_v43, %v3202_v21 }
  0xaa   :  { %2247 = vmatprep.mubr.msk.f32.mxu0 %vm164_vm6, %v3829_v13  ;;  %vm822_vm6 = vcmp.eq.s32.totalorder %v3026_v44, %v3202_v21  ;;  %v3262_v10 = vsel %vm819_vm5, 1.0, %v3831_v6 }
  0xab   :  { %v3265_v11 = vsel %vm822_vm6, 1.0, %v3831_v6 }
  0xad   :  { %2248 = vmatmul.mubr.msk.f32.gmra.mrb[2].mxu0 %vm165_vm7, %v3829_v13  ;;  %vm173_vm7 = vcmp.eq.s32.totalorder %v3134_v9, %v149_v1 }
  0xae   :  { %2250 = vmatprep.mubr.msk.f32.mxu0 %vm166_vm8, %v3829_v13  ;;  %vm174_vm8 = vcmp.eq.s32.totalorder %v3134_v9, %v152_v2 }
  0xb1   :  { %2251 = vmatmul.mubr.msk.f32.gmra.mrb[4].mxu0 %vm167_vm11, %v3829_v13  ;;  %vm175_vm11 = vcmp.eq.s32.totalorder %v3134_v9, %v155_v8 }
  0xb2   :  { %2253 = vmatprep.mubr.msk.f32.mxu0 %vm168_vm12, %v3829_v13  ;;  %vm176_vm12 = vcmp.eq.s32.totalorder %v3134_v9, %v158_v12  ;;  %v1280_v12 = vld [vmem:[%s3826_s7] sm:$0xff] }
  0xb3   :  { %862 = vadd.xlane.f32.xlu0 %v3214_v28  ;;  %864 = vadd.xlane.f32.xlu1 %v3217_v29 }
  0xb5   :  { %2254 = vmatmul.mubr.msk.f32.gmra.mrb[6].mxu0 %vm169_vm15, %v3829_v13  ;;  %vm177_vm15 = vcmp.eq.s32.totalorder %v3134_v9, %v161_v16 }
  0xb6   :  { %2256 = vmatprep.mubr.msk.f32.mxu0 %vm170_vm0, %v3829_v13  ;;  %vm825_vm0 = vcmp.eq.s32.totalorder %v3071_v55, %v3202_v21 }
  0xb7   :  { %866 = vadd.xlane.f32.xlu0 %v3230_v31  ;;  %870 = vadd.xlane.f32.xlu1 %v3233_v34  ;;  %v3307_v22 = vsel %vm825_vm0, 1.0, %v3831_v6 }
  0xb9   :  { %2257 = vmatmul.mubr.msk.f32.gmra.mrb[8].mxu0 %vm171_vm3, %v3829_v13  ;;  %vm829_vm3 = vcmp.eq.s32.totalorder %v3099_v62, %v3202_v21  ;;  %v1282_v21 = vld [vmem:[%s3826_s7 + $0x10] sm:$0xff] }
  0xba   :  { %2259 = vmatprep.mubr.msk.f32.mxu0 %vm172_vm4, %v3829_v13  ;;  %v3323_v1 = vsel %vm829_vm3, 1.0, %v3831_v6  ;;  %v1283_v6 = vld [vmem:[%s3826_s7 + $0x18] sm:$0xff] }
  0xbb   :  { %868 = vadd.xlane.f32.xlu0 %v3246_v5  ;;  %874 = vadd.xlane.f32.xlu1 %v3249_v7  ;;  %3868 = vst [vmem:[#allocation19_spill] sm:$0xff] %v3323_v1 }
  0xbd   :  { %2260 = vmatmul.mubr.msk.f32.gmra.mrb[10].mxu0 %vm173_vm7, %v3829_v13 }
  0xbe   :  { %2262 = vmatprep.mubr.msk.f32.mxu0 %vm174_vm8, %v3829_v13 }
  0xbf   :  { %872 = vadd.xlane.f32.xlu0 %v3262_v10  ;;  %878 = vadd.xlane.f32.xlu1 %v3265_v11 }
  0xc1   :  { %2263 = vmatmul.mubr.msk.f32.gmra.mrb[12].mxu0 %vm175_vm11, %v3829_v13 }
  0xc2   :  { %2265 = vmatprep.mubr.msk.f32.mxu0 %vm176_vm12, %v3829_v13 }
  0xc3   :  { %876 = vadd.xlane.f32.xlu0 %v3278_v14  ;;  %882 = vadd.xlane.f32.xlu1 %v3281_v15 }
  0xc5   :  { %2266 = vmatmul.mubr.msk.f32.gmra.mrb[14].mxu0 %vm177_vm15, %v3829_v13 }
  0xc7   :  { %880 = vadd.xlane.f32.xlu0 %v3294_v17  ;;  %886 = vadd.xlane.f32.xlu1 %v3297_v20 }
  0xcb   :  { %884 = vadd.xlane.f32.xlu0 %v3307_v22  ;;  %890 = vadd.xlane.f32.xlu1 %v3310_v23 }
  0xcf   :  { %888 = vadd.xlane.f32.xlu0 %v3317_v30 }
  0xd3   :  { %892 = vadd.xlane.f32.xlu0 %v3323_v1  ;;  %v3326_v2 = vpop.xlane.xlu1 %281 }
  0xd7   :  { %v3328_v8 = vpop.xlane.xlu1 %287 }
  0xdb   :  { %v3333_v16 = vpop.xlane.xlu1 %291 }
  0xdc   :  { %1298 = vperm.xlu1 %2754, %v1280_v12   ;;  %v1281_v12 = vld [vmem:[%s3826_s7 + $0x8] sm:$0xff] }
  0xdf   :  { %v3338_v13 = vpop.xlane.xlu1 %295 }
  0xe0   :  { %1304 = vperm.xlu1 %2754, %v1282_v21   ;;  %v1287_v21 = vld [vmem:[%s3826_s7 + $0x38] sm:$0xff] }
  0xe3   :  { %v3343_v62 = vpop.xlane.xlu1 %299 }
  0xe4   :  { %1307 = vperm.xlu1 %2754, %v1283_v6   ;;  %v1284_v6 = vld [vmem:[%s3826_s7 + $0x20] sm:$0xff] }
  0xe7   :  { %v3351_v56 = vpop.xlane.xlu1 %303 }
  0xe8   :  { %1313 = vperm.xlu1 %2754, %v1285_v59   ;;  %v1286_v59 = vld [vmem:[%s3826_s7 + $0x30] sm:$0xff] }
  0xe9   :  { %1301 = vperm.xlu0 %2743, %v1281_v12  }
  0xeb   :  { %v3359_v55 = vpop.xlane.xlu1 %307 }
  0xec   :  { %1319 = vperm.xlu1 %2754, %v1287_v21   ;;  %v1291_v21 = vld [vmem:[%s3826_s7 + $0x58] sm:$0xff] }
  0xed   :  { %1310 = vperm.xlu0 %2743, %v1284_v6   ;;  %v1288_v6 = vld [vmem:[%s3826_s7 + $0x40] sm:$0xff] }
  0xef   :  { %v716_v12 = vpop.permute.xlu1 %715 }
  0xf0   :  { %vm762_vm4 = vcmp.eq.s32.totalorder %v3134_v9, %v716_v12  ;;  %1325 = vperm.xlu1 %2754, %v1289_v52   ;;  %v1290_v52 = vld [vmem:[%s3826_s7 + $0x50] sm:$0xff]  ;;  %v1292_v12 = vld [vmem:[%s3826_s7 + $0x60] sm:$0xff] }
  0xf1   :  { %1316 = vperm.xlu0 %2743, %v1286_v59   ;;  %2356 = vmatprep.mubr.msk.f32.mxu0 %vm762_vm4, %v3869_v51  ;;  %v1295_v59 = vld [vmem:[%s3826_s7 + $0x78] sm:$0xff] }
  0xf4   :  { %1331 = vperm.xlu1 %2754, %v1291_v21   ;;  %v1294_v21 = vld [vmem:[%s3826_s7 + $0x70] sm:$0xff] }
  0xf5   :  { %1322 = vperm.xlu0 %2743, %v1288_v6   ;;  %v280_v6 = vpop.xlane.xlu0 %279 }
  0xf6   :  { %v311_v47 = vmax.f32 %v280_v6, 1.0 }
  0xf8   :  { %1337 = vperm.xlu1 %2754, %v1293_v48   ;;  %2755 = vrcp.f32 %v311_v47 }
  0xf9   :  { %1328 = vperm.xlu0 %2743, %v1290_v52   ;;  %v284_v44 = vpop.xlane.xlu0 %283 }
  0xfc   :  { %1343 = vperm.xlu1 %2754, %v1295_v59  }
  0xfd   :  { %1334 = vperm.xlu0 %2743, %v1292_v12   ;;  %v286_v35 = vpop.xlane.xlu0 %285 }
 0x101   :  { %1340 = vperm.xlu0 %2743, %v1294_v21   ;;  %v290_v6 = vpop.xlane.xlu0 %289 }
 0x102   :  { %v2756_v48 = vpop.eup %2755 }
 0x103   :  { %v343_v52 = vmul.f32 %v2756_v48, %v2999_v37 }
 0x105   :  { %2300 = vmatprep.mubr.f32.mxu1 %v343_v52  ;;  %v312_v52 = vmax.f32 %v3326_v2, 1.0 }
 0x107   :  { %2757 = vrcp.f32 %v312_v52 }
 0x111   :  { %v2758_v52 = vpop.eup %2757 }
 0x17c   :  { %v2246_v43 = vpop.f32.mrb[0].mxu0 }
 0x17d   :  { %v441_v40 = vpop.f32.mrb[1].mxu0 }
 0x17e   :  { %v2580_v39 = vpack.c.bf16 %v2246_v43, %v441_v40  ;;  %v313_v43 = vmax.f32 %v284_v44, 1.0  ;;  %v317_v44 = vmax.f32 %v3333_v16, 1.0  ;;  %v321_v16 = vmax.f32 %v3343_v62, 1.0 }
 0x180   :  { %v2249_v36 = vpop.f32.mrb[2].mxu0  ;;  %2581 = vmatprep.subr.bf16.mxu1 %v2580_v39  ;;  %2759 = vrcp.f32 %v313_v43 }
 0x181   :  { %v451_v59 = vpop.f32.mrb[3].mxu0  ;;  %2583 = vmatpush3.bf16.msra.mxu1 %v2580_v39  ;;  %v294_v39 = vpop.xlane.xlu0 %293 }
 0x182   :  { %v2584_v12 = vpack.c.bf16 %v2249_v36, %v451_v59  ;;  %v314_v59 = vmax.f32 %v286_v35, 1.0  ;;  %v318_v35 = vmax.f32 %v294_v39, 1.0 }
 0x184   :  { %v2252_v33 = vpop.f32.mrb[4].mxu0  ;;  %2585 = vmatprep.subr.bf16.mxu1 %v2584_v12  ;;  %2761 = vrcp.f32 %v314_v59  ;;  %v344_v59 = vmul.f32 %v2758_v52, %v3002_v38 }
 0x185   :  { %v461_v21 = vpop.f32.mrb[5].mxu0  ;;  %2587 = vmatpush3.bf16.msra.mxu1 %v2584_v12 }
 0x186   :  { %v2588_v32 = vpack.c.bf16 %v2252_v33, %v461_v21  ;;  %v315_v33 = vmax.f32 %v3328_v8, 1.0  ;;  %v319_v8 = vmax.f32 %v3338_v13, 1.0 }
 0x188   :  { %v2255_v47 = vpop.f32.mrb[6].mxu0  ;;  %2589 = vmatprep.subr.bf16.mxu1 %v2588_v32  ;;  %2763 = vrcp.f32 %v315_v33 }
 0x189   :  { %v471_v37 = vpop.f32.mrb[7].mxu0  ;;  %2591 = vmatpush3.bf16.msra.mxu1 %v2588_v32  ;;  %v316_v32 = vmax.f32 %v290_v6, 1.0 }
 0x18a   :  { %v2592_v48 = vpack.c.bf16 %v2255_v47, %v471_v37  ;;  %v2760_v6 = vpop.eup %2759 }
 0x18b   :  { %2765 = vrcp.f32 %v316_v32  ;;  %v345_v33 = vmul.f32 %v2760_v6, %v3015_v41  ;;  %v325_v41 = vmax.f32 %v3359_v55, 1.0 }
 0x18c   :  { %v2258_v40 = vpop.f32.mrb[8].mxu0  ;;  %2593 = vmatprep.subr.bf16.mxu1 %v2592_v48  ;;  %2767 = vrcp.f32 %v317_v44 }
 0x18d   :  { %v481_v1 = vpop.f32.mrb[9].mxu0  ;;  %2595 = vmatpush3.bf16.msra.mxu1 %v2592_v48  ;;  %2769 = vrcp.f32 %v318_v35 }
 0x18e   :  { %v2596_v36 = vpack.c.bf16 %v2258_v40, %v481_v1  ;;  %v298_v1 = vpop.xlane.xlu0 %297  ;;  %2771 = vrcp.f32 %v319_v8  ;;  %v2762_v39 = vpop.eup %2761 }
 0x190   :  { %v2261_v23 = vpop.f32.mrb[10].mxu0  ;;  %2597 = vmatprep.subr.bf16.mxu1 %v2596_v36 }
 0x191   :  { %v491_v12 = vpop.f32.mrb[11].mxu0  ;;  %2599 = vmatpush3.bf16.msra.mxu1 %v2596_v36  ;;  %v320_v36 = vmax.f32 %v298_v1, 1.0 }
 0x192   :  { %v2600_v21 = vpack.c.bf16 %v2261_v23, %v491_v12  ;;  %v302_v43 = vpop.xlane.xlu0 %301  ;;  %v2764_v12 = vpop.eup %2763 }
 0x193   :  { %2773 = vrcp.f32 %v320_v36  ;;  %v322_v13 = vmax.f32 %v302_v43, 1.0  ;;  %v347_v62 = vmul.f32 %v2764_v12, %v3018_v42 }
 0x194   :  { %v2264_v2 = vpop.f32.mrb[12].mxu0  ;;  %2601 = vmatprep.subr.bf16.mxu1 %v2600_v21  ;;  %2775 = vrcp.f32 %v321_v16 }
 0x195   :  { %v501_v47 = vpop.f32.mrb[13].mxu0  ;;  %2603 = vmatpush3.bf16.msra.mxu1 %v2600_v21  ;;  %v323_v21 = vmax.f32 %v3351_v56, 1.0  ;;  %v2766_v44 = vpop.eup %2765  ;;  %2777 = vrcp.f32 %v322_v13 }
 0x196   :  { %v2604_v37 = vpack.c.bf16 %v2264_v2, %v501_v47  ;;  %v306_v32 = vpop.xlane.xlu0 %305  ;;  %v346_v2 = vmul.f32 %v2762_v39, %v3031_v45  ;;  %v2768_v1 = vpop.eup %2767  ;;  %v348_v47 = vmul.f32 %v2766_v44, %v3047_v49 }
 0x197   :  { %v324_v38 = vmax.f32 %v306_v32, 1.0  ;;  %2779 = vrcp.f32 %v323_v21  ;;  %v349_v56 = vmul.f32 %v2768_v1, %v3034_v46 }
 0x198   :  { %v2267_v48 = vpop.f32.mrb[14].mxu0  ;;  %2605 = vmatprep.subr.bf16.mxu1 %v2604_v37 }
 0x199   :  { %v511_v23 = vpop.f32.mrb[15].mxu0  ;;  %2607 = vmatpush3.bf16.msra.mxu1 %v2604_v37  ;;  %v2770_v37 = vpop.eup %2769  ;;  %2781 = vrcp.f32 %v324_v38 }
 0x19a   :  { %v2608_v40 = vpack.c.bf16 %v2267_v48, %v511_v23  ;;  %v2772_v35 = vpop.eup %2771  ;;  %v310_v48 = vpop.xlane.xlu0 %309  ;;  %2783 = vrcp.f32 %v325_v41  ;;  %v350_v42 = vmul.f32 %v2770_v37, %v3063_v53 }
 0x19b   :  { %v326_v45 = vmax.f32 %v310_v48, 1.0  ;;  %v351_v23 = vmul.f32 %v2772_v35, %v3050_v50 }
 0x19c   :  { %2609 = vmatprep.subr.bf16.mxu1 %v2608_v40 }
 0x19d   :  { %2611 = vmatpush3.bf16.msra.mxu1 %v2608_v40  ;;  %v2774_v8 = vpop.eup %2773  ;;  %2785 = vrcp.f32 %v326_v45 }
 0x19e   :  { %v2776_v55 = vpop.eup %2775  ;;  %v352_v49 = vmul.f32 %v2774_v8, %v3079_v57 }
 0x19f   :  { %v2778_v52 = vpop.eup %2777  ;;  %v353_v46 = vmul.f32 %v2776_v55, %v3066_v54  ;;  %v3413_v54 = vpop.permute.xlu1 %721 }
 0x1a0   :  { %2301 = vmatmul.mubr.f32.vlgmr.msra.gmra.mrb[0].mxu1 %v344_v59  ;;  %v354_v6 = vmul.f32 %v2778_v52, %v3092_v60  ;;  %vm764_vm6 = vcmp.eq.s32.totalorder %v3134_v9, %v3413_v54 }
 0x1a1   :  { %2303 = vmatprep.mubr.f32.mxu1 %v345_v33  ;;  %v2780_v40 = vpop.eup %2779 }
 0x1a2   :  { %v355_v53 = vmul.f32 %v2780_v40, %v3082_v58 }
 0x1a3   :  { %v2782_v43 = vpop.eup %2781  ;;  %v3415_v60 = vpop.permute.xlu1 %724 }
 0x1a4   :  { %2304 = vmatmul.mubr.f32.gmra.mrb[2].mxu1 %v346_v2  ;;  %v2784_v36 = vpop.eup %2783  ;;  %v356_v50 = vmul.f32 %v2782_v43, %v3104_v63  ;;  %vm765_vm7 = vcmp.eq.s32.totalorder %v3134_v9, %v3415_v60 }
 0x1a5   :  { %2306 = vmatprep.mubr.f32.mxu1 %v347_v62  ;;  %v357_v57 = vmul.f32 %v2784_v36, %v3095_v61 }
 0x1a7   :  { %v2786_v16 = vpop.eup %2785  ;;  %v3417_v39 = vpop.permute.xlu1 %730 }
 0x1a8   :  { %2307 = vmatmul.mubr.f32.gmra.mrb[4].mxu1 %v348_v47  ;;  %v358_v59 = vmul.f32 %v2786_v16, %v3109_v0  ;;  %vm767_vm9 = vcmp.eq.s32.totalorder %v3134_v9, %v3417_v39 }
 0x1a9   :  { %2309 = vmatprep.mubr.f32.mxu1 %v349_v56 }
 0x1ab   :  { %v3419_v58 = vpop.permute.xlu1 %736 }
 0x1ac   :  { %2310 = vmatmul.mubr.f32.gmra.mrb[6].mxu1 %v350_v42  ;;  %vm769_vm11 = vcmp.eq.s32.totalorder %v3134_v9, %v3419_v58 }
 0x1ad   :  { %2312 = vmatprep.mubr.f32.mxu1 %v351_v23  ;;  %v719_v23 = vpop.permute.xlu0 %718 }
 0x1ae   :  { %vm763_vm5 = vcmp.eq.s32.totalorder %v3134_v9, %v719_v23 }
 0x1af   :  { %v3421_v33 = vpop.permute.xlu1 %742 }
 0x1b0   :  { %2313 = vmatmul.mubr.f32.gmra.mrb[8].mxu1 %v352_v49  ;;  %vm771_vm13 = vcmp.eq.s32.totalorder %v3134_v9, %v3421_v33 }
 0x1b1   :  { %2315 = vmatprep.mubr.f32.mxu1 %v353_v46  ;;  %v728_v43 = vpop.permute.xlu0 %727 }
 0x1b2   :  { %vm766_vm8 = vcmp.eq.s32.totalorder %v3134_v9, %v728_v43 }
 0x1b3   :  { %v3431_v32 = vpop.permute.xlu1 %748 }
 0x1b4   :  { %2316 = vmatmul.mubr.f32.gmra.mrb[10].mxu1 %v354_v6  ;;  %vm773_vm15 = vcmp.eq.s32.totalorder %v3134_v9, %v3431_v32 }
 0x1b5   :  { %2318 = vmatprep.mubr.f32.mxu1 %v355_v53  ;;  %v734_v16 = vpop.permute.xlu0 %733 }
 0x1b6   :  { %vm768_vm10 = vcmp.eq.s32.totalorder %v3134_v9, %v734_v16 }
 0x1b8   :  { %2319 = vmatmul.mubr.f32.gmra.mrb[12].mxu1 %v356_v50 }
 0x1b9   :  { %2321 = vmatprep.mubr.f32.mxu1 %v357_v57 }
 0x1bc   :  { %2322 = vmatmul.mubr.f32.gmra.mrb[14].mxu1 %v358_v59  ;;  %v740_v59 = vpop.permute.xlu0 %739 }
 0x1bd   :  { %vm770_vm12 = vcmp.eq.s32.totalorder %v3134_v9, %v740_v59 }
 0x273   :  { %v2302_v63 = vpop.f32.mrb[0].mxu1 }
 0x274   :  { %v3424_v12 = vadd.f32 %v2302_v63, %v2947_v19  ;;  %v586_v61 = vpop.f32.mrb[1].mxu1  ;;  %v746_v63 = vpop.permute.xlu0 %745 }
 0x275   :  { %v3427_v13 = vadd.f32 %v586_v61, %v2942_v18  ;;  %vm772_vm14 = vcmp.eq.s32.totalorder %v3134_v9, %v746_v63 }
 0x277   :  { %v2305_v0 = vpop.f32.mrb[2].mxu1  ;;  %v2612_v21 = vpack.c.bf16 %v3424_v12, %v3427_v13 }
 0x278   :  { %v3434_v2 = vadd.f32 %v2305_v0, %v3171_v27  ;;  %v596_v44 = vpop.f32.mrb[3].mxu1  ;;  %v3447_v27 = vpop.permute.xlu1 %754 }
 0x279   :  { %v3437_v62 = vadd.f32 %v596_v44, %v3169_v26  ;;  %2613 = vmatprep.subr.bf16.mxu0 %v2612_v21  ;;  %v752_v39 = vpop.permute.xlu0 %751  ;;  %vm775_vm1 = vcmp.eq.s32.totalorder %v3134_v9, %v3447_v27 }
 0x27a   :  { %2615 = vmatpush3.bf16.msra.mxu0 %v2612_v21  ;;  %vm774_vm0 = vcmp.eq.s32.totalorder %v3134_v9, %v752_v39 }
 0x27b   :  { %v2308_v19 = vpop.f32.mrb[4].mxu1  ;;  %v2616_v18 = vpack.c.bf16 %v3434_v2, %v3437_v62 }
 0x27c   :  { %v3442_v1 = vadd.f32 %v2308_v19, %v3167_v25  ;;  %v606_v38 = vpop.f32.mrb[5].mxu1  ;;  %v3461_v48 = vpop.permute.xlu1 %760 }
 0x27d   :  { %v3445_v41 = vadd.f32 %v3162_v24, %v606_v38  ;;  %2617 = vmatprep.subr.bf16.mxu0 %v2616_v18  ;;  %v758_v61 = vpop.permute.xlu0 %757  ;;  %vm777_vm3 = vcmp.eq.s32.totalorder %v3134_v9, %v3461_v48 }
 0x27e   :  { %2619 = vmatpush3.bf16.msra.mxu0 %v2616_v18  ;;  %vm776_vm2 = vcmp.eq.s32.totalorder %v3134_v9, %v758_v61 }
 0x27f   :  { %v2311_v47 = vpop.f32.mrb[6].mxu1  ;;  %v2620_v26 = vpack.c.bf16 %v3442_v1, %v3445_v41 }
 0x280   :  { %v3452_v37 = vadd.f32 %v2311_v47, %v3183_v3  ;;  %v616_v56 = vpop.f32.mrb[7].mxu1 }
 0x281   :  { %v3455_v35 = vadd.f32 %v616_v56, %v3185_v4  ;;  %2621 = vmatprep.subr.bf16.mxu0 %v2620_v26  ;;  %v3469_v4 = vpop.xlane.xlu1 %864  ;;  %v863_v0 = vpop.xlane.xlu0 %862 }
 0x282   :  { %2623 = vmatpush3.bf16.msra.mxu0 %v2620_v26  ;;  %v894_v21 = vmax.f32 %v863_v0, 1.0 }
 0x283   :  { %v3457_v25 = vpop.f32.mrb[8].mxu1  ;;  %v2624_v24 = vpack.c.bf16 %v3452_v37, %v3455_v35 }
 0x284   :  { %v3463_v45 = vpop.f32.mrb[9].mxu1  ;;  %2787 = vrcp.f32 %v894_v21 }
 0x285   :  { %2625 = vmatprep.subr.bf16.mxu0 %v2624_v24  ;;  %v2628_v3 = vpack.c.bf16 %v3457_v25, %v3463_v45  ;;  %v3479_v46 = vpop.xlane.xlu1 %870  ;;  %v867_v19 = vpop.xlane.xlu0 %866 }
 0x286   :  { %2627 = vmatpush3.bf16.msra.mxu0 %v2624_v24  ;;  %v896_v16 = vmax.f32 %v867_v19, 1.0  ;;  %v898_v0 = vmax.f32 %v3479_v46, 1.0 }
 0x287   :  { %v3465_v42 = vpop.f32.mrb[10].mxu1  ;;  %2629 = vmatprep.subr.bf16.mxu0 %v2628_v3 }
 0x288   :  { %v3471_v8 = vpop.f32.mrb[11].mxu1 }
 0x289   :  { %v2632_v49 = vpack.c.bf16 %v3465_v42, %v3471_v8  ;;  %v3489_v50 = vpop.xlane.xlu1 %874  ;;  %v869_v56 = vpop.xlane.xlu0 %868 }
 0x28a   :  { %2631 = vmatpush3.bf16.msra.mxu0 %v2628_v3 }
 0x28b   :  { %v3473_v55 = vpop.f32.mrb[12].mxu1  ;;  %2633 = vmatprep.subr.bf16.mxu0 %v2632_v49 }
 0x28c   :  { %v3477_v52 = vpop.f32.mrb[13].mxu1 }
 0x28d   :  { %v2636_v6 = vpack.c.bf16 %v3473_v55, %v3477_v52  ;;  %v3495_v57 = vpop.xlane.xlu1 %878 }
 0x28e   :  { %2635 = vmatpush3.bf16.msra.mxu0 %v2632_v49  ;;  %v2788_v32 = vpop.eup %2787  ;;  %v873_v49 = vpop.xlane.xlu0 %872  ;;  %v902_v46 = vmax.f32 %v3495_v57, 1.0 }
 0x28f   :  { %v3481_v40 = vpop.f32.mrb[14].mxu1  ;;  %2637 = vmatprep.subr.bf16.mxu0 %v2636_v6  ;;  %v926_v44 = vmul.f32 %v2788_v32, %v3214_v28 }
 0x290   :  { %v3485_v53 = vpop.f32.mrb[15].mxu1 }
 0x291   :  { %v2640_v36 = vpack.c.bf16 %v3481_v40, %v3485_v53  ;;  %v3505_v54 = vpop.xlane.xlu1 %882  ;;  %2412 = vmatprep.mubr.f32.mxu1 %v926_v44 }
 0x292   :  { %2639 = vmatpush3.bf16.msra.mxu0 %v2636_v6  ;;  %v877_v39 = vpop.xlane.xlu0 %876 }
 0x293   :  { %2641 = vmatprep.subr.bf16.mxu0 %v2640_v36 }
 0x295   :  { %v3514_v60 = vpop.xlane.xlu1 %886 }
 0x296   :  { %2643 = vmatpush3.bf16.msra.mxu0 %v2640_v36  ;;  %v895_v36 = vmax.f32 %v3469_v4, 1.0  ;;  %v900_v4 = vmax.f32 %v3489_v50, 1.0  ;;  %v881_v19 = vpop.xlane.xlu0 %880 }
 0x297   :  { %v903_v50 = vmax.f32 %v881_v19, 1.0 }
 0x298   :  { %2789 = vrcp.f32 %v895_v36 }
 0x299   :  { %2357 = vmatmul.mubr.msk.f32.vlgmr.msra.gmra.mrb[16].mxu0 %vm763_vm5, %v3869_v51  ;;  %v3524_v58 = vpop.xlane.xlu1 %890  ;;  %2791 = vrcp.f32 %v896_v16 }
 0x29a   :  { %2359 = vmatprep.mubr.msk.f32.mxu0 %vm764_vm6, %v3869_v51 }
 0x29d   :  { %2360 = vmatmul.mubr.msk.f32.gmra.mrb[18].mxu0 %vm765_vm7, %v3869_v51  ;;  %v1299_v33 = vpop.permute.xlu1 %1298 }
 0x29e   :  { %2362 = vmatprep.mubr.msk.f32.mxu0 %vm766_vm8, %v3869_v51  ;;  %vm1345_vm4 = vcmp.eq.s32.totalorder %v3134_v9, %v1299_v33  ;;  %v897_v33 = vmax.f32 %v869_v56, 1.0 }
 0x2a0   :  { %2793 = vrcp.f32 %v897_v33 }
 0x2a1   :  { %2363 = vmatmul.mubr.msk.f32.gmra.mrb[20].mxu0 %vm767_vm9, %v3869_v51  ;;  %2795 = vrcp.f32 %v898_v0 }
 0x2a2   :  { %2365 = vmatprep.mubr.msk.f32.mxu0 %vm768_vm10, %v3869_v51 }
 0x2a5   :  { %2366 = vmatmul.mubr.msk.f32.gmra.mrb[22].mxu0 %vm769_vm11, %v3869_v51 }
 0x2a6   :  { %2368 = vmatprep.mubr.msk.f32.mxu0 %vm770_vm12, %v3869_v51 }
 0x2a9   :  { %2369 = vmatmul.mubr.msk.f32.gmra.mrb[24].mxu0 %vm771_vm13, %v3869_v51 }
 0x2aa   :  { %2371 = vmatprep.mubr.msk.f32.mxu0 %vm772_vm14, %v3869_v51 }
 0x2ad   :  { %2372 = vmatmul.mubr.msk.f32.gmra.mrb[26].mxu0 %vm773_vm15, %v3869_v51 }
 0x2ae   :  { %2374 = vmatprep.mubr.msk.f32.mxu0 %vm774_vm0, %v3869_v51 }
 0x2b1   :  { %2375 = vmatmul.mubr.msk.f32.gmra.mrb[28].mxu0 %vm775_vm1, %v3869_v51 }
 0x2b2   :  { %2377 = vmatprep.mubr.msk.f32.mxu0 %vm776_vm2, %v3869_v51 }
 0x2b5   :  { %2378 = vmatmul.mubr.msk.f32.gmra.mrb[30].mxu0 %vm777_vm3, %v3869_v51 }
 0x2b6   :  { %2468 = vmatprep.mubr.msk.f32.mxu0 %vm1345_vm4, %v3869_v51 }
 0x36c   :  { %v2358_v18 = vpop.f32.mrb[16].mxu0 }
 0x36d   :  { %v1024_v38 = vpop.f32.mrb[17].mxu0 }
 0x36e   :  { %v2644_v27 = vpack.c.bf16 %v2358_v18, %v1024_v38  ;;  %v899_v18 = vmax.f32 %v873_v49, 1.0 }
 0x370   :  { %v2361_v47 = vpop.f32.mrb[18].mxu0  ;;  %2645 = vmatprep.subr.bf16.mxu1 %v2644_v27  ;;  %2797 = vrcp.f32 %v899_v18 }
 0x371   :  { %v1034_v26 = vpop.f32.mrb[19].mxu0  ;;  %2647 = vmatpush3.bf16.msra.mxu1 %v2644_v27  ;;  %2799 = vrcp.f32 %v900_v4 }
 0x372   :  { %v2648_v24 = vpack.c.bf16 %v2361_v47, %v1034_v26  ;;  %v901_v26 = vmax.f32 %v877_v39, 1.0 }
 0x374   :  { %v2364_v48 = vpop.f32.mrb[20].mxu0  ;;  %2649 = vmatprep.subr.bf16.mxu1 %v2648_v24  ;;  %2801 = vrcp.f32 %v901_v26 }
 0x375   :  { %v1044_v3 = vpop.f32.mrb[21].mxu0  ;;  %2651 = vmatpush3.bf16.msra.mxu1 %v2648_v24  ;;  %v2790_v24 = vpop.eup %2789  ;;  %2803 = vrcp.f32 %v902_v46 }
 0x376   :  { %v2652_v23 = vpack.c.bf16 %v2364_v48, %v1044_v3  ;;  %v2792_v3 = vpop.eup %2791  ;;  %2805 = vrcp.f32 %v903_v50  ;;  %v3876_v50 = vld [vmem:[#allocation5_spill] sm:$0xff] }
 0x377   :  { %v928_v57 = vmul.f32 %v2792_v3, %v3230_v31  ;;  %v908_v31 = vmax.f32 %v3524_v58, 1.0  ;;  %v3874_v3 = vld [vmem:[#allocation4_spill] sm:$0xff] }
 0x378   :  { %v2367_v6 = vpop.f32.mrb[22].mxu0  ;;  %2653 = vmatprep.subr.bf16.mxu1 %v2652_v23 }
 0x379   :  { %v1054_v28 = vpop.f32.mrb[23].mxu0  ;;  %2655 = vmatpush3.bf16.msra.mxu1 %v2652_v23  ;;  %v885_v23 = vpop.xlane.xlu0 %884 }
 0x37a   :  { %v2656_v43 = vpack.c.bf16 %v2367_v6, %v1054_v28  ;;  %v904_v6 = vmax.f32 %v3505_v54, 1.0  ;;  %v927_v28 = vmul.f32 %v2790_v24, %v3217_v29  ;;  %v905_v16 = vmax.f32 %v885_v23, 1.0  ;;  %v3871_v24 = vld [vmem:[#allocation19_spill] sm:$0xff] }
 0x37c   :  { %v2370_v59 = vpop.f32.mrb[24].mxu0  ;;  %2657 = vmatprep.subr.bf16.mxu1 %v2656_v43  ;;  %2807 = vrcp.f32 %v904_v6 }
 0x37d   :  { %v1064_v63 = vpop.f32.mrb[25].mxu0  ;;  %2659 = vmatpush3.bf16.msra.mxu1 %v2656_v43  ;;  %v2794_v43 = vpop.eup %2793  ;;  %2809 = vrcp.f32 %v905_v16 }
 0x37e   :  { %v2660_v61 = vpack.c.bf16 %v2370_v59, %v1064_v63  ;;  %v2796_v36 = vpop.eup %2795  ;;  %v906_v59 = vmax.f32 %v3514_v60, 1.0  ;;  %v889_v63 = vpop.xlane.xlu0 %888  ;;  %v929_v39 = vmul.f32 %v2794_v43, %v3246_v5  ;;  %v3877_v43 = vld [vmem:[#allocation6_spill] sm:$0xff] }
 0x37f   :  { %v930_v54 = vmul.f32 %v2796_v36, %v3233_v34  ;;  %v907_v29 = vmax.f32 %v889_v63, 1.0  ;;  %v3880_v63 = vld [vmem:[#allocation9_spill] sm:$0xff] }
 0x380   :  { %v2373_v21 = vpop.f32.mrb[26].mxu0  ;;  %2661 = vmatprep.subr.bf16.mxu1 %v2660_v61  ;;  %2811 = vrcp.f32 %v906_v59  ;;  %v3879_v59 = vld [vmem:[#allocation8_spill] sm:$0xff] }
 0x381   :  { %v1074_v32 = vpop.f32.mrb[27].mxu0  ;;  %2663 = vmatpush3.bf16.msra.mxu1 %v2660_v61  ;;  %v2798_v61 = vpop.eup %2797  ;;  %2813 = vrcp.f32 %v907_v29 }
 0x382   :  { %v2664_v44 = vpack.c.bf16 %v2373_v21, %v1074_v32  ;;  %v2800_v33 = vpop.eup %2799  ;;  %v931_v0 = vmul.f32 %v2798_v61, %v3262_v10  ;;  %2815 = vrcp.f32 %v908_v31 }
 0x383   :  { %v2802_v21 = vpop.eup %2801  ;;  %v932_v60 = vmul.f32 %v2800_v33, %v3249_v7  ;;  %v3882_v33 = vld [vmem:[#allocation11_spill] sm:$0xff] }
 0x384   :  { %v2376_v38 = vpop.f32.mrb[28].mxu0  ;;  %2665 = vmatprep.subr.bf16.mxu1 %v2664_v44  ;;  %v2804_v32 = vpop.eup %2803  ;;  %v933_v34 = vmul.f32 %v2802_v21, %v3278_v14  ;;  %v3884_v21 = vld [vmem:[#allocation13_spill] sm:$0xff] }
 0x385   :  { %v1084_v27 = vpop.f32.mrb[29].mxu0  ;;  %2667 = vmatpush3.bf16.msra.mxu1 %v2664_v44  ;;  %v893_v44 = vpop.xlane.xlu0 %892  ;;  %v934_v4 = vmul.f32 %v2804_v32, %v3265_v11 }
 0x386   :  { %v2668_v47 = vpack.c.bf16 %v2376_v38, %v1084_v27  ;;  %v909_v5 = vmax.f32 %v893_v44, 1.0  ;;  %v2806_v18 = vpop.eup %2805  ;;  %v3885_v44 = vld [vmem:[#allocation14_spill] sm:$0xff] }
 0x387   :  { %v2808_v58 = vpop.eup %2807  ;;  %v935_v10 = vmul.f32 %v2806_v18, %v3294_v17 }
 0x388   :  { %v2379_v56 = vpop.f32.mrb[30].mxu0  ;;  %2669 = vmatprep.subr.bf16.mxu1 %v2668_v47  ;;  %2817 = vrcp.f32 %v909_v5  ;;  %v2810_v19 = vpop.eup %2809  ;;  %v936_v7 = vmul.f32 %v2808_v58, %v3281_v15  ;;  %v1987_v15 = vld [vmem:[%s3827_s8] ss:$0 sm:$0xff]  ;;  %v3886_v5 = vld [vmem:[#allocation15_spill] sm:$0xff] }
 0x389   :  { %v1094_v48 = vpop.f32.mrb[31].mxu0  ;;  %2671 = vmatpush3.bf16.msra.mxu1 %v2668_v47  ;;  %v937_v27 = vmul.f32 %v2810_v19, %v3307_v22  ;;  %v3872_v22 = vld [vmem:[#allocation2_spill] sm:$0xff]  ;;  %vm1399_vm7 = vcmp.eq.s32.totalorder %v3874_v3, %v1987_v15  ;;  %vm1401_vm8 = vcmp.eq.s32.totalorder %v3876_v50, %v1987_v15  ;;  %vm1400_vm9 = vcmp.eq.s32.totalorder %v3877_v43, %v1987_v15 }
 0x38a   :  { %v2672_v49 = vpack.c.bf16 %v2379_v56, %v1094_v48  ;;  %v2812_v38 = vpop.eup %2811  ;;  %v3870_v56 = vld [vmem:[#allocation18_spill] sm:$0xff]  ;;  %vm1397_vm5 = vcmp.eq.s32.totalorder %v3872_v22, %v1987_v15  ;;  %vm1402_vm11 = vcmp.eq.s32.totalorder %v3879_v59, %v1987_v15  ;;  %vm1405_vm12 = vcmp.eq.s32.totalorder %v3880_v63, %v1987_v15 }
 0x38b   :  { %v2814_v47 = vpop.eup %2813  ;;  %v938_v14 = vmul.f32 %v2812_v38, %v3297_v20  ;;  %v3873_v20 = vld [vmem:[#allocation3_spill] sm:$0xff]  ;;  %vm1407_vm14 = vcmp.eq.s32.totalorder %v3882_v33, %v1987_v15  ;;  %vm1409_vm0 = vcmp.eq.s32.totalorder %v3884_v21, %v1987_v15  ;;  %vm1408_vm1 = vcmp.eq.s32.totalorder %v3885_v44, %v1987_v15 }
 0x38c   :  { %2673 = vmatprep.subr.bf16.mxu1 %v2672_v49  ;;  %v2816_v26 = vpop.eup %2815  ;;  %v939_v11 = vmul.f32 %v2814_v47, %v3317_v30  ;;  %vm1398_vm6 = vcmp.eq.s32.totalorder %v3873_v20, %v1987_v15  ;;  %v3875_v30 = vmov 0.0   ;;  %vm1411_vm2 = vcmp.eq.s32.totalorder %v3886_v5, %v1987_v15 }
 0x38d   :  { %2675 = vmatpush3.bf16.msra.mxu1 %v2672_v49  ;;  %v940_v17 = vmul.f32 %v2816_v26, %v3870_v56  ;;  %v3569_v23 = vsel %vm1397_vm5, 1.0, %v3875_v30  ;;  %v3572_v49 = vsel %vm1398_vm6, 1.0, %v3875_v30  ;;  %v3578_v6 = vsel %vm1399_vm7, 1.0, %v3875_v30 }
 0x38e   :  { %1445 = vadd.xlane.f32.xlu0 %v3569_v23  ;;  %1447 = vadd.xlane.f32.xlu1 %v3572_v49  ;;  %v3588_v36 = vsel %vm1400_vm9, 1.0, %v3875_v30  ;;  %v3601_v61 = vsel %vm1405_vm12, 1.0, %v3875_v30  ;;  %v3611_v31 = vsel %vm1407_vm14, 1.0, %v3875_v30  ;;  %v3621_v32 = vsel %vm1409_vm0, 1.0, %v3875_v30 }
 0x38f   :  { %v3631_v18 = vsel %vm1411_vm2, 1.0, %v3875_v30 }
 0x390   :  { %2413 = vmatmul.mubr.f32.vlgmr.msra.gmra.mrb[16].mxu1 %v927_v28  ;;  %v3581_v28 = vsel %vm1401_vm8, 1.0, %v3875_v30 }
 0x391   :  { %2415 = vmatprep.mubr.f32.mxu1 %v928_v57  ;;  %v3878_v57 = vld [vmem:[#allocation7_spill] sm:$0xff] }
 0x392   :  { %v2818_v46 = vpop.eup %2817  ;;  %vm1403_vm10 = vcmp.eq.s32.totalorder %v3878_v57, %v1987_v15  ;;  %1449 = vadd.xlane.f32.xlu0 %v3578_v6  ;;  %1453 = vadd.xlane.f32.xlu1 %v3581_v28 }
 0x393   :  { %v941_v48 = vmul.f32 %v2818_v46, %v3871_v24  ;;  %v3591_v16 = vsel %vm1403_vm10, 1.0, %v3875_v30 }
 0x394   :  { %2416 = vmatmul.mubr.f32.gmra.mrb[18].mxu1 %v929_v39  ;;  %v3598_v39 = vsel %vm1402_vm11, 1.0, %v3875_v30 }
 0x395   :  { %2418 = vmatprep.mubr.f32.mxu1 %v930_v54  ;;  %v3881_v54 = vld [vmem:[#allocation10_spill] sm:$0xff] }
 0x396   :  { %1451 = vadd.xlane.f32.xlu0 %v3588_v36  ;;  %1457 = vadd.xlane.f32.xlu1 %v3591_v16  ;;  %vm1404_vm13 = vcmp.eq.s32.totalorder %v3881_v54, %v1987_v15 }
 0x397   :  { %v3608_v29 = vsel %vm1404_vm13, 1.0, %v3875_v30 }
 0x398   :  { %2419 = vmatmul.mubr.f32.gmra.mrb[20].mxu1 %v931_v0  ;;  %v3883_v0 = vld [vmem:[#allocation12_spill] sm:$0xff] }
 0x399   :  { %2421 = vmatprep.mubr.f32.mxu1 %v932_v60  ;;  %vm1406_vm15 = vcmp.eq.s32.totalorder %v3883_v0, %v1987_v15 }
 0x39a   :  { %1455 = vadd.xlane.f32.xlu0 %v3598_v39  ;;  %1461 = vadd.xlane.f32.xlu1 %v3601_v61  ;;  %v3618_v60 = vsel %vm1406_vm15, 1.0, %v3875_v30 }
 0x39c   :  { %2422 = vmatmul.mubr.f32.gmra.mrb[22].mxu1 %v933_v34  ;;  %v3628_v34 = vsel %vm1408_vm1, 1.0, %v3875_v30 }
 0x39d   :  { %2424 = vmatprep.mubr.f32.mxu1 %v934_v4  ;;  %v3887_v4 = vld [vmem:[#allocation16_spill] sm:$0xff] }
 0x39e   :  { %1459 = vadd.xlane.f32.xlu0 %v3608_v29  ;;  %1465 = vadd.xlane.f32.xlu1 %v3611_v31  ;;  %vm1410_vm3 = vcmp.eq.s32.totalorder %v3887_v4, %v1987_v15 }
 0x39f   :  { %v3637_v58 = vsel %vm1410_vm3, 1.0, %v3875_v30 }
 0x3a0   :  { %2425 = vmatmul.mubr.f32.gmra.mrb[24].mxu1 %v935_v10  ;;  %v3888_v10 = vld [vmem:[#allocation17_spill] sm:$0xff] }
 0x3a1   :  { %2427 = vmatprep.mubr.f32.mxu1 %v936_v7  ;;  %vm1412_vm4 = vcmp.eq.s32.totalorder %v3888_v10, %v1987_v15 }
 0x3a2   :  { %1463 = vadd.xlane.f32.xlu0 %v3618_v60  ;;  %1469 = vadd.xlane.f32.xlu1 %v3621_v32  ;;  %v3642_v19 = vsel %vm1412_vm4, 1.0, %v3875_v30 }
 0x3a4   :  { %2428 = vmatmul.mubr.f32.gmra.mrb[26].mxu1 %v937_v27 }
 0x3a5   :  { %2430 = vmatprep.mubr.f32.mxu1 %v938_v14 }
 0x3a6   :  { %1467 = vadd.xlane.f32.xlu0 %v3628_v34  ;;  %1473 = vadd.xlane.f32.xlu1 %v3631_v18 }
 0x3a8   :  { %2431 = vmatmul.mubr.f32.gmra.mrb[28].mxu1 %v939_v11 }
 0x3a9   :  { %2433 = vmatprep.mubr.f32.mxu1 %v940_v17 }
 0x3aa   :  { %1471 = vadd.xlane.f32.xlu0 %v3637_v58 }
 0x3ac   :  { %2434 = vmatmul.mubr.f32.gmra.mrb[30].mxu1 %v941_v48 }
 0x3ae   :  { %1475 = vadd.xlane.f32.xlu0 %v3642_v19 }
 0x463   :  { %v2414_v7 = vpop.f32.mrb[16].mxu1 }
 0x464   :  { %v3646_v38 = vadd.f32 %v2414_v7, %v3424_v12  ;;  %v1169_v27 = vpop.f32.mrb[17].mxu1 }
 0x465   :  { %v3649_v47 = vadd.f32 %v1169_v27, %v3427_v13 }
 0x467   :  { %v2417_v14 = vpop.f32.mrb[18].mxu1  ;;  %v2676_v26 = vpack.c.bf16 %v3646_v38, %v3649_v47 }
 0x468   :  { %v3654_v11 = vadd.f32 %v2417_v14, %v3434_v2  ;;  %v1179_v46 = vpop.f32.mrb[19].mxu1 }
 0x469   :  { %v3657_v56 = vadd.f32 %v1179_v46, %v3437_v62  ;;  %2677 = vmatprep.subr.bf16.mxu0 %v2676_v26 }
 0x46a   :  { %2679 = vmatpush3.bf16.msra.mxu0 %v2676_v26 }
 0x46b   :  { %v2420_v17 = vpop.f32.mrb[20].mxu1  ;;  %v2680_v12 = vpack.c.bf16 %v3654_v11, %v3657_v56 }
 0x46c   :  { %v3662_v13 = vadd.f32 %v2420_v17, %v3442_v1  ;;  %v1189_v24 = vpop.f32.mrb[21].mxu1 }
 0x46d   :  { %v3665_v48 = vadd.f32 %v1189_v24, %v3445_v41  ;;  %2681 = vmatprep.subr.bf16.mxu0 %v2680_v12 }
 0x46e   :  { %2683 = vmatpush3.bf16.msra.mxu0 %v2680_v12 }
 0x46f   :  { %v2423_v2 = vpop.f32.mrb[22].mxu1  ;;  %v2684_v62 = vpack.c.bf16 %v3662_v13, %v3665_v48 }
 0x470   :  { %v3670_v15 = vadd.f32 %v2423_v2, %v3452_v37  ;;  %v1199_v22 = vpop.f32.mrb[23].mxu1  ;;  %v1305_v37 = vpop.permute.xlu1 %1304 }
 0x471   :  { %v3673_v20 = vadd.f32 %v1199_v22, %v3455_v35  ;;  %2685 = vmatprep.subr.bf16.mxu0 %v2684_v62  ;;  %vm1347_vm6 = vcmp.eq.s32.totalorder %v3134_v9, %v1305_v37 }
 0x472   :  { %2687 = vmatpush3.bf16.msra.mxu0 %v2684_v62 }
 0x473   :  { %v2426_v1 = vpop.f32.mrb[24].mxu1  ;;  %v2688_v41 = vpack.c.bf16 %v3670_v15, %v3673_v20 }
 0x474   :  { %v3678_v3 = vadd.f32 %v2426_v1, %v3457_v25  ;;  %v1209_v30 = vpop.f32.mrb[25].mxu1  ;;  %v1302_v25 = vpop.permute.xlu0 %1301 }
 0x475   :  { %v3681_v50 = vadd.f32 %v1209_v30, %v3463_v45  ;;  %2689 = vmatprep.subr.bf16.mxu0 %v2688_v41  ;;  %v1308_v21 = vpop.permute.xlu1 %1307  ;;  %vm1346_vm5 = vcmp.eq.s32.totalorder %v3134_v9, %v1302_v25 }
 0x476   :  { %2691 = vmatpush3.bf16.msra.mxu0 %v2688_v41  ;;  %vm1348_vm7 = vcmp.eq.s32.totalorder %v3134_v9, %v1308_v21 }
 0x477   :  { %v2429_v43 = vpop.f32.mrb[26].mxu1  ;;  %v2692_v35 = vpack.c.bf16 %v3678_v3, %v3681_v50 }
 0x478   :  { %v3686_v57 = vadd.f32 %v2429_v43, %v3465_v42  ;;  %v1219_v59 = vpop.f32.mrb[27].mxu1  ;;  %v1311_v5 = vpop.permute.xlu0 %1310 }
 0x479   :  { %v3689_v63 = vadd.f32 %v1219_v59, %v3471_v8  ;;  %2693 = vmatprep.subr.bf16.mxu0 %v2692_v35  ;;  %vm1349_vm8 = vcmp.eq.s32.totalorder %v3134_v9, %v1311_v5 }
 0x47a   :  { %2695 = vmatpush3.bf16.msra.mxu0 %v2692_v35 }
 0x47b   :  { %v2432_v54 = vpop.f32.mrb[28].mxu1  ;;  %v2696_v45 = vpack.c.bf16 %v3686_v57, %v3689_v63 }
 0x47c   :  { %v3694_v33 = vadd.f32 %v2432_v54, %v3473_v55  ;;  %v1229_v0 = vpop.f32.mrb[29].mxu1  ;;  %v1314_v55 = vpop.permute.xlu1 %1313 }
 0x47d   :  { %v3697_v44 = vadd.f32 %v1229_v0, %v3477_v52  ;;  %2697 = vmatprep.subr.bf16.mxu0 %v2696_v45  ;;  %v1317_v27 = vpop.permute.xlu0 %1316  ;;  %vm1350_vm9 = vcmp.eq.s32.totalorder %v3134_v9, %v1314_v55 }
 0x47e   :  { %2699 = vmatpush3.bf16.msra.mxu0 %v2696_v45  ;;  %vm1351_vm10 = vcmp.eq.s32.totalorder %v3134_v9, %v1317_v27 }
 0x47f   :  { %v2435_v42 = vpop.f32.mrb[30].mxu1  ;;  %v2700_v8 = vpack.c.bf16 %v3694_v33, %v3697_v44 }
 0x480   :  { %v3702_v4 = vadd.f32 %v2435_v42, %v3481_v40  ;;  %v1239_v10 = vpop.f32.mrb[31].mxu1  ;;  %v1320_v14 = vpop.permute.xlu1 %1319 }
 0x481   :  { %v3705_v7 = vadd.f32 %v1239_v10, %v3485_v53  ;;  %2701 = vmatprep.subr.bf16.mxu0 %v2700_v8  ;;  %v1323_v40 = vpop.permute.xlu0 %1322  ;;  %vm1352_vm11 = vcmp.eq.s32.totalorder %v3134_v9, %v1320_v14 }
 0x482   :  { %2703 = vmatpush3.bf16.msra.mxu0 %v2700_v8  ;;  %vm1353_vm12 = vcmp.eq.s32.totalorder %v3134_v9, %v1323_v40 }
 0x483   :  { %v2704_v52 = vpack.c.bf16 %v3702_v4, %v3705_v7 }
 0x484   :  { %v1326_v53 = vpop.permute.xlu1 %1325 }
 0x485   :  { %2705 = vmatprep.subr.bf16.mxu0 %v2704_v52  ;;  %v1329_v26 = vpop.permute.xlu0 %1328  ;;  %vm1354_vm13 = vcmp.eq.s32.totalorder %v3134_v9, %v1326_v53 }
 0x486   :  { %2707 = vmatpush3.bf16.msra.mxu0 %v2704_v52  ;;  %vm1355_vm14 = vcmp.eq.s32.totalorder %v3134_v9, %v1329_v26 }
 0x488   :  { %v1332_v46 = vpop.permute.xlu1 %1331 }
 0x489   :  { %2469 = vmatmul.mubr.msk.f32.vlgmr.msra.gmra.mrb[32].mxu0 %vm1346_vm5, %v3869_v51  ;;  %v1335_v17 = vpop.permute.xlu0 %1334  ;;  %vm1356_vm15 = vcmp.eq.s32.totalorder %v3134_v9, %v1332_v46 }
 0x48a   :  { %2471 = vmatprep.mubr.msk.f32.mxu0 %vm1347_vm6, %v3869_v51  ;;  %vm1357_vm0 = vcmp.eq.s32.totalorder %v3134_v9, %v1335_v17 }
 0x48c   :  { %v1338_v12 = vpop.permute.xlu1 %1337 }
 0x48d   :  { %2472 = vmatmul.mubr.msk.f32.gmra.mrb[34].mxu0 %vm1348_vm7, %v3869_v51  ;;  %v1341_v24 = vpop.permute.xlu0 %1340  ;;  %vm1358_vm1 = vcmp.eq.s32.totalorder %v3134_v9, %v1338_v12 }
 0x48e   :  { %2474 = vmatprep.mubr.msk.f32.mxu0 %vm1349_vm8, %v3869_v51  ;;  %vm1359_vm2 = vcmp.eq.s32.totalorder %v3134_v9, %v1341_v24 }
 0x490   :  { %v1344_v2 = vpop.permute.xlu1 %1343 }
 0x491   :  { %2475 = vmatmul.mubr.msk.f32.gmra.mrb[36].mxu0 %vm1350_vm9, %v3869_v51  ;;  %vm1360_vm3 = vcmp.eq.s32.totalorder %v3134_v9, %v1344_v2  ;;  %v1446_v62 = vpop.xlane.xlu0 %1445 }
 0x492   :  { %2477 = vmatprep.mubr.msk.f32.mxu0 %vm1351_vm10, %v3869_v51  ;;  %v1477_v22 = vmax.f32 %v1446_v62, 1.0 }
 0x494   :  { %2819 = vrcp.f32 %v1477_v22  ;;  %v1448_v59 = vpop.xlane.xlu1 %1447 }
 0x495   :  { %2478 = vmatmul.mubr.msk.f32.gmra.mrb[38].mxu0 %vm1352_vm11, %v3869_v51  ;;  %v1450_v30 = vpop.xlane.xlu0 %1449  ;;  %v1478_v52 = vmax.f32 %v1448_v59, 1.0 }
 0x496   :  { %2480 = vmatprep.mubr.msk.f32.mxu0 %vm1353_vm12, %v3869_v51  ;;  %v1479_v14 = vmax.f32 %v1450_v30, 1.0 }
 0x497   :  { %2821 = vrcp.f32 %v1478_v52 }
 0x498   :  { %v1454_v0 = vpop.xlane.xlu1 %1453  ;;  %2823 = vrcp.f32 %v1479_v14 }
 0x499   :  { %2481 = vmatmul.mubr.msk.f32.gmra.mrb[40].mxu0 %vm1354_vm13, %v3869_v51  ;;  %v1452_v54 = vpop.xlane.xlu0 %1451  ;;  %v1481_v24 = vmax.f32 %v1454_v0, 1.0 }
 0x49a   :  { %2483 = vmatprep.mubr.msk.f32.mxu0 %vm1355_vm14, %v3869_v51  ;;  %v1480_v46 = vmax.f32 %v1452_v54, 1.0 }
 0x49c   :  { %v1458_v10 = vpop.xlane.xlu1 %1457  ;;  %2825 = vrcp.f32 %v1480_v46 }
 0x49d   :  { %2484 = vmatmul.mubr.msk.f32.gmra.mrb[42].mxu0 %vm1356_vm15, %v3869_v51  ;;  %v1456_v8 = vpop.xlane.xlu0 %1455  ;;  %2827 = vrcp.f32 %v1481_v24  ;;  %v1483_v30 = vmax.f32 %v1458_v10, 1.0 }
 0x49e   :  { %2486 = vmatprep.mubr.msk.f32.mxu0 %vm1357_vm0, %v3869_v51  ;;  %v2820_v1 = vpop.eup %2819 }
 0x49f   :  { %v1509_v41 = vmul.f32 %v2820_v1, %v3569_v23  ;;  %v1482_v1 = vmax.f32 %v1456_v8, 1.0 }
 0x4a0   :  { %v1462_v17 = vpop.xlane.xlu1 %1461 }
 0x4a1   :  { %2487 = vmatmul.mubr.msk.f32.gmra.mrb[44].mxu0 %vm1358_vm1, %v3869_v51  ;;  %2524 = vmatprep.mubr.f32.mxu1 %v1509_v41  ;;  %v1460_v40 = vpop.xlane.xlu0 %1459  ;;  %2829 = vrcp.f32 %v1482_v1  ;;  %v1485_v54 = vmax.f32 %v1462_v17, 1.0 }
 0x4a2   :  { %2489 = vmatprep.mubr.msk.f32.mxu0 %vm1359_vm2, %v3869_v51  ;;  %v1484_v59 = vmax.f32 %v1460_v40, 1.0  ;;  %2831 = vrcp.f32 %v1483_v30 }
 0x4a4   :  { %2833 = vrcp.f32 %v1484_v59 }
 0x4a5   :  { %2490 = vmatmul.mubr.msk.f32.gmra.mrb[46].mxu0 %vm1360_vm3, %v3869_v51  ;;  %v1464_v22 = vpop.xlane.xlu0 %1463  ;;  %2835 = vrcp.f32 %v1485_v54 }
 0x55c   :  { %v2470_v37 = vpop.f32.mrb[32].mxu0 }
 0x55d   :  { %v1607_v43 = vpop.f32.mrb[33].mxu0 }
 0x55e   :  { %v2708_v35 = vpack.c.bf16 %v2470_v37, %v1607_v43  ;;  %v1466_v43 = vpop.xlane.xlu1 %1465 }
 0x560   :  { %v2473_v25 = vpop.f32.mrb[34].mxu0  ;;  %2709 = vmatprep.subr.bf16.mxu1 %v2708_v35 }
 0x561   :  { %v1617_v45 = vpop.f32.mrb[35].mxu0  ;;  %2711 = vmatpush3.bf16.msra.mxu1 %v2708_v35 }
 0x562   :  { %v2712_v9 = vpack.c.bf16 %v2473_v25, %v1617_v45  ;;  %v1468_v45 = vpop.xlane.xlu0 %1467  ;;  %v1470_v8 = vpop.xlane.xlu1 %1469 }
 0x563   :  { %v1488_v14 = vmax.f32 %v1468_v45, 1.0 }
 0x564   :  { %v2476_v51 = vpop.f32.mrb[36].mxu0  ;;  %2713 = vmatprep.subr.bf16.mxu1 %v2712_v9 }
 0x565   :  { %v1627_v21 = vpop.f32.mrb[37].mxu0  ;;  %2715 = vmatpush3.bf16.msra.mxu1 %v2712_v9  ;;  %v2822_v9 = vpop.eup %2821 }
 0x566   :  { %v2716_v42 = vpack.c.bf16 %v2476_v51, %v1627_v21  ;;  %v2824_v51 = vpop.eup %2823  ;;  %v1474_v17 = vpop.xlane.xlu1 %1473 }
 0x567   :  { %v2826_v10 = vpop.eup %2825  ;;  %v1491_v24 = vmax.f32 %v1474_v17, 1.0 }
 0x568   :  { %v2479_v23 = vpop.f32.mrb[38].mxu0  ;;  %2717 = vmatprep.subr.bf16.mxu1 %v2716_v42  ;;  %v2828_v52 = vpop.eup %2827  ;;  %v1512_v40 = vmul.f32 %v2826_v10, %v3588_v36 }
 0x569   :  { %v1637_v5 = vpop.f32.mrb[39].mxu0  ;;  %2719 = vmatpush3.bf16.msra.mxu1 %v2716_v42  ;;  %v1486_v42 = vmax.f32 %v1464_v22, 1.0  ;;  %v1513_v46 = vmul.f32 %v2828_v52, %v3581_v28 }
 0x56a   :  { %v2720_v55 = vpack.c.bf16 %v2479_v23, %v1637_v5  ;;  %v1510_v23 = vmul.f32 %v2822_v9, %v3572_v49  ;;  %v1487_v5 = vmax.f32 %v1466_v43, 1.0 }
 0x56b   :  { %2837 = vrcp.f32 %v1486_v42 }
 0x56c   :  { %v2482_v27 = vpop.f32.mrb[40].mxu0  ;;  %2721 = vmatprep.subr.bf16.mxu1 %v2720_v55  ;;  %2839 = vrcp.f32 %v1487_v5 }
 0x56d   :  { %v1647_v53 = vpop.f32.mrb[41].mxu0  ;;  %2723 = vmatpush3.bf16.msra.mxu1 %v2720_v55  ;;  %v1511_v55 = vmul.f32 %v2824_v51, %v3578_v6  ;;  %2841 = vrcp.f32 %v1488_v14 }
 0x56e   :  { %v2724_v26 = vpack.c.bf16 %v2482_v27, %v1647_v53  ;;  %v1472_v27 = vpop.xlane.xlu0 %1471  ;;  %v1489_v53 = vmax.f32 %v1470_v8, 1.0 }
 0x570   :  { %v2485_v12 = vpop.f32.mrb[42].mxu0  ;;  %2725 = vmatprep.subr.bf16.mxu1 %v2724_v26  ;;  %2843 = vrcp.f32 %v1489_v53 }
 0x571   :  { %v1657_v2 = vpop.f32.mrb[43].mxu0  ;;  %2727 = vmatpush3.bf16.msra.mxu1 %v2724_v26  ;;  %v2830_v26 = vpop.eup %2829 }
 0x572   :  { %v2728_v62 = vpack.c.bf16 %v2485_v12, %v1657_v2  ;;  %v2832_v49 = vpop.eup %2831  ;;  %v1490_v12 = vmax.f32 %v1472_v27, 1.0  ;;  %v1514_v6 = vmul.f32 %v2830_v26, %v3598_v39  ;;  %v1476_v2 = vpop.xlane.xlu0 %1475 }
 0x573   :  { %v1515_v22 = vmul.f32 %v2832_v49, %v3591_v16  ;;  %v1492_v1 = vmax.f32 %v1476_v2, 1.0 }
 0x574   :  { %v2488_v41 = vpop.f32.mrb[44].mxu0  ;;  %2729 = vmatprep.subr.bf16.mxu1 %v2728_v62  ;;  %2845 = vrcp.f32 %v1490_v12 }
 0x575   :  { %v1667_v37 = vpop.f32.mrb[45].mxu0  ;;  %2731 = vmatpush3.bf16.msra.mxu1 %v2728_v62  ;;  %v2834_v62 = vpop.eup %2833  ;;  %2847 = vrcp.f32 %v1491_v24 }
 0x576   :  { %v2732_v35 = vpack.c.bf16 %v2488_v41, %v1667_v37  ;;  %v2836_v36 = vpop.eup %2835  ;;  %v1516_v28 = vmul.f32 %v2834_v62, %v3608_v29  ;;  %2849 = vrcp.f32 %v1492_v1 }
 0x577   :  { %v2838_v41 = vpop.eup %2837  ;;  %v1517_v30 = vmul.f32 %v2836_v36, %v3601_v61 }
 0x578   :  { %v2491_v25 = vpop.f32.mrb[46].mxu0  ;;  %2733 = vmatprep.subr.bf16.mxu1 %v2732_v35  ;;  %v2840_v37 = vpop.eup %2839  ;;  %v1518_v39 = vmul.f32 %v2838_v41, %v3618_v60 }
 0x579   :  { %v1677_v0 = vpop.f32.mrb[47].mxu0  ;;  %2735 = vmatpush3.bf16.msra.mxu1 %v2732_v35  ;;  %v2842_v43 = vpop.eup %2841  ;;  %v1519_v16 = vmul.f32 %v2840_v37, %v3611_v31 }
 0x57a   :  { %v2736_v21 = vpack.c.bf16 %v2491_v25, %v1677_v0  ;;  %v2844_v35 = vpop.eup %2843  ;;  %v1520_v59 = vmul.f32 %v2842_v43, %v3628_v34 }
 0x57b   :  { %v1521_v29 = vmul.f32 %v2844_v35, %v3621_v32 }
 0x57c   :  { %2737 = vmatprep.subr.bf16.mxu1 %v2736_v21 }
 0x57d   :  { %2739 = vmatpush3.bf16.msra.mxu1 %v2736_v21 }
 0x57e   :  { %v2846_v25 = vpop.eup %2845 }
 0x57f   :  { %v2848_v54 = vpop.eup %2847  ;;  %v1522_v61 = vmul.f32 %v2846_v25, %v3637_v58 }
 0x580   :  { %2525 = vmatmul.mubr.f32.vlgmr.msra.gmra.mrb[32].mxu1 %v1510_v23  ;;  %v2850_v45 = vpop.eup %2849  ;;  %v1523_v60 = vmul.f32 %v2848_v54, %v3631_v18 }
 0x581   :  { %2527 = vmatprep.mubr.f32.mxu1 %v1511_v55  ;;  %v1524_v9 = vmul.f32 %v2850_v45, %v3642_v19 }
 0x584   :  { %2528 = vmatmul.mubr.f32.gmra.mrb[34].mxu1 %v1512_v40 }
 0x585   :  { %2530 = vmatprep.mubr.f32.mxu1 %v1513_v46 }
 0x588   :  { %2531 = vmatmul.mubr.f32.gmra.mrb[36].mxu1 %v1514_v6 }
 0x589   :  { %2533 = vmatprep.mubr.f32.mxu1 %v1515_v22 }
 0x58c   :  { %2534 = vmatmul.mubr.f32.gmra.mrb[38].mxu1 %v1516_v28 }
 0x58d   :  { %2536 = vmatprep.mubr.f32.mxu1 %v1517_v30 }
 0x590   :  { %2537 = vmatmul.mubr.f32.gmra.mrb[40].mxu1 %v1518_v39 }
 0x591   :  { %2539 = vmatprep.mubr.f32.mxu1 %v1519_v16 }
 0x594   :  { %2540 = vmatmul.mubr.f32.gmra.mrb[42].mxu1 %v1520_v59 }
 0x595   :  { %2542 = vmatprep.mubr.f32.mxu1 %v1521_v29 }
 0x598   :  { %2543 = vmatmul.mubr.f32.gmra.mrb[44].mxu1 %v1522_v61 }
 0x599   :  { %2545 = vmatprep.mubr.f32.mxu1 %v1523_v60 }
 0x59c   :  { %2546 = vmatmul.mubr.f32.gmra.mrb[46].mxu1 %v1524_v9 }
 0x653   :  { %v2526_v31 = vpop.f32.mrb[32].mxu1 }
 0x654   :  { %v1832_v34 = vadd.f32 %v2526_v31, %v3646_v38  ;;  %v1752_v0 = vpop.f32.mrb[33].mxu1 }
 0x655   :  { %v1831_v51 = vadd.f32 %v1752_v0, %v3649_v47 }
 0x656   :  { %1848 = vst [vmem:[%s3828_s9 + $0x8] sm:$0xff] %v1832_v34 }
 0x657   :  { %1847 = vst [vmem:[%s3828_s9] sm:$0xff] %v1831_v51  ;;  %v2529_v32 = vpop.f32.mrb[34].mxu1 }
 0x658   :  { %v1834_v18 = vadd.f32 %v2529_v32, %v3654_v11  ;;  %v1762_v58 = vpop.f32.mrb[35].mxu1 }
 0x659   :  { %v1833_v19 = vadd.f32 %v1762_v58, %v3657_v56 }
 0x65a   :  { %1850 = vst [vmem:[%s3828_s9 + $0x18] sm:$0xff] %v1834_v18 }
 0x65b   :  { %1849 = vst [vmem:[%s3828_s9 + $0x10] sm:$0xff] %v1833_v19  ;;  %v2532_v38 = vpop.f32.mrb[36].mxu1 }
 0x65c   :  { %v1836_v47 = vadd.f32 %v2532_v38, %v3662_v13  ;;  %v1772_v21 = vpop.f32.mrb[37].mxu1 }
 0x65d   :  { %v1835_v42 = vadd.f32 %v1772_v21, %v3665_v48 }
 0x65e   :  { %1852 = vst [vmem:[%s3828_s9 + $0x28] sm:$0xff] %v1836_v47 }
 0x65f   :  { %1851 = vst [vmem:[%s3828_s9 + $0x20] sm:$0xff] %v1835_v42  ;;  %v2535_v11 = vpop.f32.mrb[38].mxu1 }
 0x660   :  { %v1838_v56 = vadd.f32 %v2535_v11, %v3670_v15  ;;  %v1782_v8 = vpop.f32.mrb[39].mxu1 }
 0x661   :  { %v1837_v23 = vadd.f32 %v1782_v8, %v3673_v20 }
 0x662   :  { %1854 = vst [vmem:[%s3828_s9 + $0x38] sm:$0xff] %v1838_v56 }
 0x663   :  { %1853 = vst [vmem:[%s3828_s9 + $0x30] sm:$0xff] %v1837_v23  ;;  %v2538_v13 = vpop.f32.mrb[40].mxu1 }
 0x664   :  { %v1840_v48 = vadd.f32 %v2538_v13, %v3678_v3  ;;  %v1792_v5 = vpop.f32.mrb[41].mxu1 }
 0x665   :  { %v1839_v10 = vadd.f32 %v1792_v5, %v3681_v50 }
 0x666   :  { %1856 = vst [vmem:[%s3828_s9 + $0x48] sm:$0xff] %v1840_v48 }
 0x667   :  { %1855 = vst [vmem:[%s3828_s9 + $0x40] sm:$0xff] %v1839_v10  ;;  %v2541_v15 = vpop.f32.mrb[42].mxu1 }
 0x668   :  { %v1842_v20 = vadd.f32 %v2541_v15, %v3686_v57  ;;  %v1802_v55 = vpop.f32.mrb[43].mxu1 }
 0x669   :  { %v1841_v52 = vadd.f32 %v1802_v55, %v3689_v63 }
 0x66a   :  { %1858 = vst [vmem:[%s3828_s9 + $0x58] sm:$0xff] %v1842_v20 }
 0x66b   :  { %1857 = vst [vmem:[%s3828_s9 + $0x50] sm:$0xff] %v1841_v52  ;;  %v2544_v3 = vpop.f32.mrb[44].mxu1 }
 0x66c   :  { %v1844_v50 = vadd.f32 %v2544_v3, %v3694_v33  ;;  %v1812_v27 = vpop.f32.mrb[45].mxu1 }
 0x66d   :  { %v1843_v14 = vadd.f32 %v1812_v27, %v3697_v44 }
 0x66e   :  { %1860 = vst [vmem:[%s3828_s9 + $0x68] sm:$0xff] %v1844_v50 }
 0x66f   :  { %1859 = vst [vmem:[%s3828_s9 + $0x60] sm:$0xff] %v1843_v14  ;;  %v2547_v57 = vpop.f32.mrb[46].mxu1 }
 0x670   :  { %v1846_v63 = vadd.f32 %v2547_v57, %v3702_v4  ;;  %v1822_v40 = vpop.f32.mrb[47].mxu1 }
 0x671   :  { %v1845_v53 = vadd.f32 %v1822_v40, %v3705_v7 }
 0x672   :  { %1862 = vst [vmem:[%s3828_s9 + $0x78] sm:$0xff] %v1846_v63 }
 0x673   :  { %1861 = vst [vmem:[%s3828_s9 + $0x70] sm:$0xff] %v1845_v53 }

</bundles_post_ra>
